<compile_context>
chip_gen: v6e
topology: v6e:2x2x1
jax: 0.10.0
libtpu: 0.0.40
codegen_flags: <defaults>
</compile_context>

<pallas_src>
import math
from functools import partial

import jax
import jax.numpy as jnp
from jax.experimental import pallas as pl
from jax.experimental.pallas import tpu as pltpu

# ---- small synthetic config (shapes consistent with the module) -------------
N_HEAD = 2
D_K = 16                        # per-head dim; d_model = N_HEAD * D_K


def _layernorm(y, gamma, beta, eps=1e-5):
    mu = jnp.mean(y, axis=-1, keepdims=True)
    var = jnp.mean((y - mu) ** 2, axis=-1, keepdims=True)
    return (y - mu) * jax.lax.rsqrt(var + eps) * gamma + beta


# ------------------------------ fused encoder kernel ---------------------------
def fused_encoder_kernel(
        x_ref, pe_ref, bias_ref, hmask_ref,
        w_in_ref, b_in_ref, g0_ref, be0_ref,
        wqkv_ref, bqkv_ref, wo_ref, bo_ref, g1_ref, be1_ref,
        w1_ref, b1_ref, w2_ref, b2_ref, g2_ref, be2_ref,
        wsep_ref, bsep_ref,
        masks_ref, attn_ref):
    bf16 = jnp.bfloat16
    f32 = jnp.float32
    n_layers = wqkv_ref.shape[0]
    n_head = hmask_ref.shape[0]
    d_model = w_in_ref.shape[1]
    d_k = d_model // n_head
    bt = x_ref.shape[0]
    scale = 1.0 / math.sqrt(d_k)

    # ---- input projection: LayerNorm(Linear(x)) + positional encoding --------
    # (dropout == identity at inference)
    h = jnp.dot(x_ref[...].astype(bf16), w_in_ref[...],
                preferred_element_type=f32) + b_in_ref[...]
    h = _layernorm(h, g0_ref[...], be0_ref[...]) + pe_ref[...]

    attn_bias = bias_ref[...]                       # (BT, BT): 0 same-batch, -1e30 otherwise

    for l in range(n_layers):                       # static unroll over layers
        x = h
        # fused QKV projection: one MXU push per layer
        qkv = jnp.dot(x.astype(bf16), wqkv_ref[l],
                      preferred_element_type=f32) + bqkv_ref[l]
        q = qkv[:, 0:d_model]
        k_t = (qkv[:, d_model:2 * d_model]).T.astype(bf16)      # (D, BT)
        v = qkv[:, 2 * d_model:3 * d_model]

        ctx = jnp.zeros((bt, d_model), f32)
        for hd in range(n_head):                    # static unroll over heads
            hm = hmask_ref[hd]                      # (1, D) 0/1 lane mask for head hd
            qh = (q * hm).astype(bf16)              # zero other heads' lanes (VPU, no slicing)
            s = jnp.dot(qh, k_t, preferred_element_type=f32) * scale
            s = s + attn_bias                       # mask cross-batch attention
            s = s - jnp.max(s, axis=-1, keepdims=True)
            e = jnp.exp(s)
            p = e * pl.reciprocal(jnp.sum(e, axis=-1, keepdims=True), approx=True)
            attn_ref[l, hd, :, :] = p               # block-diagonal (BT, BT) probs
            # masked V keeps each head in its own lane slots -> sum == concat-heads
            ctx = ctx + jnp.dot(p.astype(bf16), (v * hm).astype(bf16),
                                preferred_element_type=f32)

        # single output projection for all heads + residual + post-norm
        y = jnp.dot(ctx.astype(bf16), wo_ref[l],
                    preferred_element_type=f32) + bo_ref[l] + x
        h1 = _layernorm(y, g1_ref[l], be1_ref[l])

        # position-wise FFN + residual + post-norm
        mid = jnp.dot(h1.astype(bf16), w1_ref[l],
                      preferred_element_type=f32) + b1_ref[l]
        mid = jnp.maximum(mid, 0.0)
        y2 = jnp.dot(mid.astype(bf16), w2_ref[l],
                     preferred_element_type=f32) + b2_ref[l] + h1
        h = _layernorm(y2, g2_ref[l], be2_ref[l])

    # ---- separation linear + sigmoid (lane-padded, full-lane stores) ---------
    z = jnp.dot(h.astype(bf16), wsep_ref[...],
                preferred_element_type=f32) + bsep_ref[...]
    masks_ref[...] = pl.reciprocal(1.0 + jnp.exp(-z), approx=True)


def _vmem_spec():
    # whole array, VMEM-resident for the single kernel invocation
    return pl.BlockSpec(memory_space=pltpu.MemorySpace.VMEM)


# ------------------------------ forward wrapper ---------------------------------
@partial(jax.jit, static_argnames=("speech_fre",))
def seq2seq_forward(src_tbf, src_len, params, speech_fre):
    """Single-channel branch of seq2seq.forward.

    src_tbf: (T, B, F) float32, src_len: (1, B) int32.
    Returns (predicted_maps (2, B, T, F), enc_attn_list [per layer (B, H, T, T)]).
    """
    del src_len  # TODO(synk): src_len-based length sort / key-padding mask omitted
    #             (all sequences assumed full length, mask == all ones).
    x = jnp.transpose(src_tbf, (1, 0, 2))                       # src.transpose(0, 1)
    B, T, _ = x.shape
    D = params["w_in"].shape[1]
    L = params["wqkv"].shape[0]
    H = N_HEAD
    BT = B * T

    x_flat = x.reshape(BT, D if False else x.shape[-1])          # (BT, F)
    pe_bt = jnp.tile(params["pe"], (B, 1))                       # (BT, D)

    # block-diagonal additive bias: -1e30 where query/key rows belong to different batches
    bidx = jnp.repeat(jnp.arange(B, dtype=jnp.int32), T)
    attn_bias = jnp.where(bidx[:, None] == bidx[None, :], 0.0, -1e30).astype(jnp.float32)

    # per-head 0/1 lane masks (heads never get sliced out of the lane axis)
    col = jnp.arange(D, dtype=jnp.int32)[None, :]
    head_mask = jnp.stack(
        [((col >= h * D_K) & (col < (h + 1) * D_K)).astype(jnp.float32) for h in range(H)])

    # lane-dense separation output: pad last dim to a multiple of 128
    sep = params["wsep"].shape[1]                                # = 2 * speech_fre
    sep_pad = max(128, ((sep + 127) // 128) * 128)
    wsep_p = jnp.zeros((D, sep_pad), jnp.float32).at[:, :sep].set(params["wsep"])
    bsep_p = jnp.zeros((1, sep_pad), jnp.float32).at[:, :sep].set(params["bsep"])

    bf = lambda a: a.astype(jnp.bfloat16)                        # MXU inputs in bf16

    masks_pad, attn = pl.pallas_call(
        fused_encoder_kernel,
        out_shape=(jax.ShapeDtypeStruct((BT, sep_pad), jnp.float32),
                   jax.ShapeDtypeStruct((L, H, BT, BT), jnp.float32)),
        in_specs=[_vmem_spec()] * 22,
        out_specs=(_vmem_spec(), _vmem_spec()),
    )(x_flat, pe_bt, attn_bias, head_mask,
      bf(params["w_in"]), params["b_in"], params["ln0_g"], params["ln0_b"],
      bf(params["wqkv"]), params["bqkv"], bf(params["wo"]), params["bo"],
      params["ln1_g"], params["ln1_b"],
      bf(params["w1"]), params["b1"], bf(params["w2"]), params["b2"],
      params["ln2_g"], params["ln2_b"],
      bf(wsep_p), bsep_p)

    # predicted_maps = sigmoid(separation_linear(contexts)) -> (2, B, T, F)
    masks = masks_pad[:, :sep].reshape(B, T, sep)
    pm = masks.reshape(B, T, 2, speech_fre)                      # .view(B, T, 2, fre)
    pm = jnp.transpose(pm, (2, 0, 1, 3))                         # .transpose(1,2).transpose(0,1)

    # extract per-batch diagonal blocks of the block-diagonal attention
    a = attn.reshape(L, H, B, T, B, T)
    a = jnp.diagonal(a, axis1=2, axis2=4)                        # (L, H, T, T, B)
    a = jnp.transpose(a, (0, 4, 1, 2, 3))                        # (L, B, H, T, T)
    enc_attn_list = [a[l] for l in range(L)]
    return pm, enc_attn_list


# ------------------------------ params / reference ------------------------------
def positional_encoding(T, D):
    pos = jnp.arange(T, dtype=jnp.float32)[:, None]
    i = jnp.arange(D)[None, :]
    angle = pos / jnp.power(10000.0, (2 * (i // 2)).astype(jnp.float32) / D)
    return jnp.where(i % 2 == 0, jnp.sin(angle), jnp.cos(angle)).astype(jnp.float32)


def init_params(key, speech_fre, d_model, d_inner, n_layers, seq_len):
    def dense(k, din, dout):
        k1, k2 = jax.random.split(k)
        w = jax.random.normal(k1, (din, dout), jnp.float32) * (1.0 / math.sqrt(din))
        b = jax.random.normal(k2, (1, dout), jnp.float32) * 0.01
        return w, b

    keys = jax.random.split(key, 2 + 6 * n_layers)
    ki = iter(keys)
    w_in, b_in = dense(next(ki), speech_fre, d_model)

    wqkv, bqkv, wo, bo, w1, b1, w2, b2 = ([] for _ in range(8))
    for _ in range(n_layers):
        wq, bq = dense(next(ki), d_model, d_model)
        wk, bk = dense(next(ki), d_model, d_model)
        wv, bv = dense(next(ki), d_model, d_model)
        wqkv.append(jnp.concatenate([wq, wk, wv], axis=1))
        bqkv.append(jnp.concatenate([bq, bk, bv], axis=1))
        w, b = dense(next(ki), d_model, d_model); wo.append(w); bo.append(b)
        w, b = dense(next(ki), d_model, d_inner); w1.append(w); b1.append(b)
        w, b = dense(next(ki), d_inner, d_model); w2.append(w); b2.append(b)

    wsep, bsep = dense(next(ki), d_model, 2 * speech_fre)
    ones = lambda *s: jnp.ones(s, jnp.float32)
    zeros = lambda *s: jnp.zeros(s, jnp.float32)
    return {
        "w_in": w_in, "b_in": b_in,
        "ln0_g": ones(1, d_model), "ln0_b": zeros(1, d_model),
        "pe": positional_encoding(seq_len, d_model),
        "wqkv": jnp.stack(wqkv), "bqkv": jnp.stack(bqkv),
        "wo": jnp.stack(wo), "bo": jnp.stack(bo),
        "ln1_g": ones(n_layers, 1, d_model), "ln1_b": zeros(n_layers, 1, d_model),
        "w1": jnp.stack(w1), "b1": jnp.stack(b1),
        "w2": jnp.stack(w2), "b2": jnp.stack(b2),
        "ln2_g": ones(n_layers, 1, d_model), "ln2_b": zeros(n_layers, 1, d_model),
        "wsep": wsep, "bsep": bsep,
    }


def seq2seq_reference(src_tbf, params, speech_fre):
    """Pure-JAX f32 reference of the same forward (for tolerance check)."""
    x = jnp.transpose(src_tbf, (1, 0, 2)).astype(jnp.float32)
    B, T, _ = x.shape
    D = params["w_in"].shape[1]
    H, dk = N_HEAD, D // N_HEAD
    h = jnp.dot(x, params["w_in"]) + params["b_in"]
    h = _layernorm(h, params["ln0_g"], params["ln0_b"]) + params["pe"][None, :, :]
    attns = []
    for l in range(params["wqkv"].shape[0]):
        qkv = jnp.dot(h, params["wqkv"][l]) + params["bqkv"][l]
        q, k, v = qkv[..., :D], qkv[..., D:2 * D], qkv[..., 2 * D:]
        qh = q.reshape(B, T, H, dk).transpose(0, 2, 1, 3)
        kh = k.reshape(B, T, H, dk).transpose(0, 2, 1, 3)
        vh = v.reshape(B, T, H, dk).transpose(0, 2, 1, 3)
        s = jnp.einsum("bhtd,bhsd->bhts", qh, kh) / math.sqrt(dk)
        p = jax.nn.softmax(s, axis=-1)
        attns.append(p)
        ctx = jnp.einsum("bhts,bhsd->bhtd", p, vh).transpose(0, 2, 1, 3).reshape(B, T, D)
        y = jnp.dot(ctx, params["wo"][l]) + params["bo"][l] + h
        h1 = _layernorm(y, params["ln1_g"][l], params["ln1_b"][l])
        m = jax.nn.relu(jnp.dot(h1, params["w1"][l]) + params["b1"][l])
        y2 = jnp.dot(m, params["w2"][l]) + params["b2"][l] + h1
        h = _layernorm(y2, params["ln2_g"][l], params["ln2_b"][l])
    z = jnp.dot(h, params["wsep"]) + params["bsep"]
    pm = jax.nn.sigmoid(z).reshape(B, T, 2, speech_fre)
    return jnp.transpose(pm, (2, 0, 1, 3)), attns


# ------------------------------------ main --------------------------------------
if __name__ == "__main__":
    T, B, FRE = 8, 2, 32            # seq, batch, input_emb_size (= speech_fre)
    D_MODEL = N_HEAD * D_K          # 32
    D_INNER = 64
    N_LAYERS = 2

    key = jax.random.PRNGKey(0)
    k_src, k_par = jax.random.split(key)
    src = jax.random.normal(k_src, (T, B, FRE), jnp.float32)
    src_len = jnp.full((1, B), T, jnp.int32)

    params = init_params(k_par, FRE, D_MODEL, D_INNER, N_LAYERS, T)

    predicted_maps, enc_attn_list = seq2seq_forward(src, src_len, params, speech_fre=FRE)
    jax.block_until_ready(predicted_maps)
    for a in enc_attn_list:
        jax.block_until_ready(a)

    assert predicted_maps.shape == (2, B, T, FRE)
    assert all(a.shape == (B, N_HEAD, T, T) for a in enc_attn_list)

    # cross-check against a pure-JAX f32 reference (bf16 MXU inputs => loose tolerance)
    pm_ref, attn_ref_list = seq2seq_reference(src, params, FRE)
    assert float(jnp.max(jnp.abs(predicted_maps - pm_ref))) < 1e-1
    for a, ar in zip(enc_attn_list, attn_ref_list):
        assert float(jnp.max(jnp.abs(a - ar))) < 1e-1

    print("KERNEL_OK")
</pallas_src>

<mosaic_0001>
module attributes {stable_mosaic.version = 11 : i64} {
  func.func @fused_encoder_kernel(%arg0: memref<16x32xf32, #tpu.memory_space<vmem>>, %arg1: memref<16x32xf32, #tpu.memory_space<vmem>>, %arg2: memref<16x16xf32, #tpu.memory_space<vmem>>, %arg3: memref<2x1x32xf32, #tpu.memory_space<vmem>>, %arg4: memref<32x32xbf16, #tpu.memory_space<vmem>>, %arg5: memref<1x32xf32, #tpu.memory_space<vmem>>, %arg6: memref<1x32xf32, #tpu.memory_space<vmem>>, %arg7: memref<1x32xf32, #tpu.memory_space<vmem>>, %arg8: memref<2x32x96xbf16, #tpu.memory_space<vmem>>, %arg9: memref<2x1x96xf32, #tpu.memory_space<vmem>>, %arg10: memref<2x32x32xbf16, #tpu.memory_space<vmem>>, %arg11: memref<2x1x32xf32, #tpu.memory_space<vmem>>, %arg12: memref<2x1x32xf32, #tpu.memory_space<vmem>>, %arg13: memref<2x1x32xf32, #tpu.memory_space<vmem>>, %arg14: memref<2x32x64xbf16, #tpu.memory_space<vmem>>, %arg15: memref<2x1x64xf32, #tpu.memory_space<vmem>>, %arg16: memref<2x64x32xbf16, #tpu.memory_space<vmem>>, %arg17: memref<2x1x32xf32, #tpu.memory_space<vmem>>, %arg18: memref<2x1x32xf32, #tpu.memory_space<vmem>>, %arg19: memref<2x1x32xf32, #tpu.memory_space<vmem>>, %arg20: memref<32x128xbf16, #tpu.memory_space<vmem>>, %arg21: memref<1x128xf32, #tpu.memory_space<vmem>>, %arg22: memref<16x128xf32, #tpu.memory_space<vmem>>, %arg23: memref<2x2x16x16xf32, #tpu.memory_space<vmem>>) attributes {dimension_semantics = [], scalar_prefetch = 0 : i64, scratch_operands = 0 : i64, tpu.core_type = #tpu.core_type<tc>} {
    %c0 = arith.constant 0 : index
    %c0_0 = arith.constant 0 : index
    %0 = vector.load %arg0[%c0, %c0_0] : memref<16x32xf32, #tpu.memory_space<vmem>>, vector<16x32xf32>
    %1 = arith.truncf %0 : vector<16x32xf32> to vector<16x32xbf16>
    %c0_1 = arith.constant 0 : index
    %c0_2 = arith.constant 0 : index
    %2 = vector.load %arg4[%c0_1, %c0_2] : memref<32x32xbf16, #tpu.memory_space<vmem>>, vector<32x32xbf16>
    %cst = arith.constant dense<0.000000e+00> : vector<16x32xf32>
    %3 = tpu.matmul %1, %2, %cst {dimension_numbers = #tpu.dot_dimension_numbers<[1], [0], [0], [1], [0, 0, 1, 1], [], []>} : vector<16x32xbf16>, vector<32x32xbf16>, vector<16x32xf32> -> vector<16x32xf32>
    %c0_3 = arith.constant 0 : index
    %c0_4 = arith.constant 0 : index
    %4 = vector.load %arg5[%c0_3, %c0_4] : memref<1x32xf32, #tpu.memory_space<vmem>>, vector<1x32xf32>
    %5 = vector.broadcast %4 : vector<1x32xf32> to vector<16x32xf32>
    %6 = arith.addf %3, %5 : vector<16x32xf32>
    %c0_5 = arith.constant 0 : index
    %c0_6 = arith.constant 0 : index
    %7 = vector.load %arg6[%c0_5, %c0_6] : memref<1x32xf32, #tpu.memory_space<vmem>>, vector<1x32xf32>
    %c0_7 = arith.constant 0 : index
    %c0_8 = arith.constant 0 : index
    %8 = vector.load %arg7[%c0_7, %c0_8] : memref<1x32xf32, #tpu.memory_space<vmem>>, vector<1x32xf32>
    %cst_9 = arith.constant dense<0.000000e+00> : vector<16xf32>
    %9 = vector.multi_reduction <add>, %6, %cst_9 [1] : vector<16x32xf32> to vector<16xf32>
    %10 = vector.shape_cast %9 : vector<16xf32> to vector<16x1xf32>
    %cst_10 = arith.constant 3.200000e+01 : f32
    %11 = vector.broadcast %cst_10 : f32 to vector<16x1xf32>
    %12 = arith.divf %10, %11 : vector<16x1xf32>
    %13 = vector.broadcast %12 : vector<16x1xf32> to vector<16x32xf32>
    %14 = arith.subf %6, %13 : vector<16x32xf32>
    %15 = arith.mulf %14, %14 : vector<16x32xf32>
    %cst_11 = arith.constant dense<0.000000e+00> : vector<16xf32>
    %16 = vector.multi_reduction <add>, %15, %cst_11 [1] : vector<16x32xf32> to vector<16xf32>
    %17 = vector.shape_cast %16 : vector<16xf32> to vector<16x1xf32>
    %cst_12 = arith.constant 3.200000e+01 : f32
    %18 = vector.broadcast %cst_12 : f32 to vector<16x1xf32>
    %19 = arith.divf %17, %18 : vector<16x1xf32>
    %20 = vector.broadcast %12 : vector<16x1xf32> to vector<16x32xf32>
    %21 = arith.subf %6, %20 : vector<16x32xf32>
    %cst_13 = arith.constant 9.99999974E-6 : f32
    %22 = vector.broadcast %cst_13 : f32 to vector<16x1xf32>
    %23 = arith.addf %19, %22 : vector<16x1xf32>
    %24 = math.rsqrt %23 : vector<16x1xf32>
    %25 = vector.broadcast %24 : vector<16x1xf32> to vector<16x32xf32>
    %26 = arith.mulf %21, %25 : vector<16x32xf32>
    %27 = vector.broadcast %7 : vector<1x32xf32> to vector<16x32xf32>
    %28 = arith.mulf %26, %27 : vector<16x32xf32>
    %29 = vector.broadcast %8 : vector<1x32xf32> to vector<16x32xf32>
    %30 = arith.addf %28, %29 : vector<16x32xf32>
    %c0_14 = arith.constant 0 : index
    %c0_15 = arith.constant 0 : index
    %31 = vector.load %arg1[%c0_14, %c0_15] : memref<16x32xf32, #tpu.memory_space<vmem>>, vector<16x32xf32>
    %32 = arith.addf %30, %31 : vector<16x32xf32>
    %c0_16 = arith.constant 0 : index
    %c0_17 = arith.constant 0 : index
    %33 = vector.load %arg2[%c0_16, %c0_17] : memref<16x16xf32, #tpu.memory_space<vmem>>, vector<16x16xf32>
    %34 = arith.truncf %32 : vector<16x32xf32> to vector<16x32xbf16>
    %c0_18 = arith.constant 0 : index
    %c0_19 = arith.constant 0 : index
    %c0_20 = arith.constant 0 : index
    %35 = vector.load %arg8[%c0_18, %c0_19, %c0_20] : memref<2x32x96xbf16, #tpu.memory_space<vmem>>, vector<1x32x96xbf16>
    %36 = vector.shape_cast %35 : vector<1x32x96xbf16> to vector<32x96xbf16>
    %cst_21 = arith.constant dense<0.000000e+00> : vector<16x96xf32>
    %37 = tpu.matmul %34, %36, %cst_21 {dimension_numbers = #tpu.dot_dimension_numbers<[1], [0], [0], [1], [0, 0, 1, 1], [], []>} : vector<16x32xbf16>, vector<32x96xbf16>, vector<16x96xf32> -> vector<16x96xf32>
    %c0_22 = arith.constant 0 : index
    %c0_23 = arith.constant 0 : index
    %c0_24 = arith.constant 0 : index
    %38 = vector.load %arg9[%c0_22, %c0_23, %c0_24] : memref<2x1x96xf32, #tpu.memory_space<vmem>>, vector<1x1x96xf32>
    %39 = vector.shape_cast %38 : vector<1x1x96xf32> to vector<1x96xf32>
    %40 = vector.broadcast %39 : vector<1x96xf32> to vector<16x96xf32>
    %41 = arith.addf %37, %40 : vector<16x96xf32>
    %42 = vector.extract_strided_slice %41 {offsets = [0, 0], sizes = [16, 32], strides = [1, 1]} : vector<16x96xf32> to vector<16x32xf32>
    %43 = vector.extract_strided_slice %41 {offsets = [0, 32], sizes = [16, 32], strides = [1, 1]} : vector<16x96xf32> to vector<16x32xf32>
    %44 = tpu.transpose %43, [1, 0] : vector<16x32xf32> -> vector<32x16xf32>
    %45 = arith.truncf %44 : vector<32x16xf32> to vector<32x16xbf16>
    %46 = vector.extract_strided_slice %41 {offsets = [0, 64], sizes = [16, 32], strides = [1, 1]} : vector<16x96xf32> to vector<16x32xf32>
    %cst_25 = arith.constant 0.000000e+00 : f32
    %47 = vector.broadcast %cst_25 : f32 to vector<16x32xf32>
    %c0_26 = arith.constant 0 : index
    %c0_27 = arith.constant 0 : index
    %c0_28 = arith.constant 0 : index
    %48 = vector.load %arg3[%c0_26, %c0_27, %c0_28] : memref<2x1x32xf32, #tpu.memory_space<vmem>>, vector<1x1x32xf32>
    %49 = vector.shape_cast %48 : vector<1x1x32xf32> to vector<1x32xf32>
    %50 = vector.broadcast %49 : vector<1x32xf32> to vector<16x32xf32>
    %51 = arith.mulf %42, %50 : vector<16x32xf32>
    %52 = arith.truncf %51 : vector<16x32xf32> to vector<16x32xbf16>
    %cst_29 = arith.constant dense<0.000000e+00> : vector<16x16xf32>
    %53 = tpu.matmul %52, %45, %cst_29 {dimension_numbers = #tpu.dot_dimension_numbers<[1], [0], [0], [1], [0, 0, 1, 1], [], []>} : vector<16x32xbf16>, vector<32x16xbf16>, vector<16x16xf32> -> vector<16x16xf32>
    %cst_30 = arith.constant 2.500000e-01 : f32
    %54 = vector.broadcast %cst_30 : f32 to vector<16x16xf32>
    %55 = arith.mulf %53, %54 : vector<16x16xf32>
    %56 = arith.addf %55, %33 : vector<16x16xf32>
    %cst_31 = arith.constant dense<0xFF800000> : vector<16xf32>
    %57 = vector.multi_reduction <maximumf>, %56, %cst_31 [1] : vector<16x16xf32> to vector<16xf32>
    %58 = vector.shape_cast %57 : vector<16xf32> to vector<16x1xf32>
    %59 = vector.broadcast %58 : vector<16x1xf32> to vector<16x16xf32>
    %60 = arith.subf %56, %59 : vector<16x16xf32>
    %61 = math.exp %60 : vector<16x16xf32>
    %cst_32 = arith.constant dense<0.000000e+00> : vector<16xf32>
    %62 = vector.multi_reduction <add>, %61, %cst_32 [1] : vector<16x16xf32> to vector<16xf32>
    %63 = vector.shape_cast %62 : vector<16xf32> to vector<16x1xf32>
    %64 = tpu.reciprocal %63 {approx = true} : vector<16x1xf32> -> vector<16x1xf32>
    %65 = vector.broadcast %64 : vector<16x1xf32> to vector<16x16xf32>
    %66 = arith.mulf %61, %65 : vector<16x16xf32>
    %c0_33 = arith.constant 0 : index
    %c0_34 = arith.constant 0 : index
    %c0_35 = arith.constant 0 : index
    %c0_36 = arith.constant 0 : index
    %67 = vector.load %arg23[%c0_33, %c0_34, %c0_35, %c0_36] : memref<2x2x16x16xf32, #tpu.memory_space<vmem>>, vector<1x1x16x16xf32>
    %68 = vector.shape_cast %67 : vector<1x1x16x16xf32> to vector<16x16xf32>
    %69 = vector.shape_cast %66 : vector<16x16xf32> to vector<1x1x16x16xf32>
    tpu.vector_store %arg23[%c0_33, %c0_34, %c0_35, %c0_36], %69 {strides = array<i32>} : memref<2x2x16x16xf32, #tpu.memory_space<vmem>>, vector<1x1x16x16xf32>,
    %70 = arith.truncf %66 : vector<16x16xf32> to vector<16x16xbf16>
    %71 = vector.broadcast %49 : vector<1x32xf32> to vector<16x32xf32>
    %72 = arith.mulf %46, %71 : vector<16x32xf32>
    %73 = arith.truncf %72 : vector<16x32xf32> to vector<16x32xbf16>
    %cst_37 = arith.constant dense<0.000000e+00> : vector<16x32xf32>
    %74 = tpu.matmul %70, %73, %cst_37 {dimension_numbers = #tpu.dot_dimension_numbers<[1], [0], [0], [1], [0, 0, 1, 1], [], []>} : vector<16x16xbf16>, vector<16x32xbf16>, vector<16x32xf32> -> vector<16x32xf32>
    %75 = arith.addf %47, %74 : vector<16x32xf32>
    %c1 = arith.constant 1 : index
    %c0_38 = arith.constant 0 : index
    %c0_39 = arith.constant 0 : index
    %76 = vector.load %arg3[%c1, %c0_38, %c0_39] : memref<2x1x32xf32, #tpu.memory_space<vmem>>, vector<1x1x32xf32>
    %77 = vector.shape_cast %76 : vector<1x1x32xf32> to vector<1x32xf32>
    %78 = vector.broadcast %77 : vector<1x32xf32> to vector<16x32xf32>
    %79 = arith.mulf %42, %78 : vector<16x32xf32>
    %80 = arith.truncf %79 : vector<16x32xf32> to vector<16x32xbf16>
    %cst_40 = arith.constant dense<0.000000e+00> : vector<16x16xf32>
    %81 = tpu.matmul %80, %45, %cst_40 {dimension_numbers = #tpu.dot_dimension_numbers<[1], [0], [0], [1], [0, 0, 1, 1], [], []>} : vector<16x32xbf16>, vector<32x16xbf16>, vector<16x16xf32> -> vector<16x16xf32>
    %cst_41 = arith.constant 2.500000e-01 : f32
    %82 = vector.broadcast %cst_41 : f32 to vector<16x16xf32>
    %83 = arith.mulf %81, %82 : vector<16x16xf32>
    %84 = arith.addf %83, %33 : vector<16x16xf32>
    %cst_42 = arith.constant dense<0xFF800000> : vector<16xf32>
    %85 = vector.multi_reduction <maximumf>, %84, %cst_42 [1] : vector<16x16xf32> to vector<16xf32>
    %86 = vector.shape_cast %85 : vector<16xf32> to vector<16x1xf32>
    %87 = vector.broadcast %86 : vector<16x1xf32> to vector<16x16xf32>
    %88 = arith.subf %84, %87 : vector<16x16xf32>
    %89 = math.exp %88 : vector<16x16xf32>
    %cst_43 = arith.constant dense<0.000000e+00> : vector<16xf32>
    %90 = vector.multi_reduction <add>, %89, %cst_43 [1] : vector<16x16xf32> to vector<16xf32>
    %91 = vector.shape_cast %90 : vector<16xf32> to vector<16x1xf32>
    %92 = tpu.reciprocal %91 {approx = true} : vector<16x1xf32> -> vector<16x1xf32>
    %93 = vector.broadcast %92 : vector<16x1xf32> to vector<16x16xf32>
    %94 = arith.mulf %89, %93 : vector<16x16xf32>
    %c0_44 = arith.constant 0 : index
    %c1_45 = arith.constant 1 : index
    %c0_46 = arith.constant 0 : index
    %c0_47 = arith.constant 0 : index
    %95 = vector.load %arg23[%c0_44, %c1_45, %c0_46, %c0_47] : memref<2x2x16x16xf32, #tpu.memory_space<vmem>>, vector<1x1x16x16xf32>
    %96 = vector.shape_cast %95 : vector<1x1x16x16xf32> to vector<16x16xf32>
    %97 = vector.shape_cast %94 : vector<16x16xf32> to vector<1x1x16x16xf32>
    tpu.vector_store %arg23[%c0_44, %c1_45, %c0_46, %c0_47], %97 {strides = array<i32>} : memref<2x2x16x16xf32, #tpu.memory_space<vmem>>, vector<1x1x16x16xf32>,
    %98 = arith.truncf %94 : vector<16x16xf32> to vector<16x16xbf16>
    %99 = vector.broadcast %77 : vector<1x32xf32> to vector<16x32xf32>
    %100 = arith.mulf %46, %99 : vector<16x32xf32>
    %101 = arith.truncf %100 : vector<16x32xf32> to vector<16x32xbf16>
    %cst_48 = arith.constant dense<0.000000e+00> : vector<16x32xf32>
    %102 = tpu.matmul %98, %101, %cst_48 {dimension_numbers = #tpu.dot_dimension_numbers<[1], [0], [0], [1], [0, 0, 1, 1], [], []>} : vector<16x16xbf16>, vector<16x32xbf16>, vector<16x32xf32> -> vector<16x32xf32>
    %103 = arith.addf %75, %102 : vector<16x32xf32>
    %104 = arith.truncf %103 : vector<16x32xf32> to vector<16x32xbf16>
    %c0_49 = arith.constant 0 : index
    %c0_50 = arith.constant 0 : index
    %c0_51 = arith.constant 0 : index
    %105 = vector.load %arg10[%c0_49, %c0_50, %c0_51] : memref<2x32x32xbf16, #tpu.memory_space<vmem>>, vector<1x32x32xbf16>
    %106 = vector.shape_cast %105 : vector<1x32x32xbf16> to vector<32x32xbf16>
    %cst_52 = arith.constant dense<0.000000e+00> : vector<16x32xf32>
    %107 = tpu.matmul %104, %106, %cst_52 {dimension_numbers = #tpu.dot_dimension_numbers<[1], [0], [0], [1], [0, 0, 1, 1], [], []>} : vector<16x32xbf16>, vector<32x32xbf16>, vector<16x32xf32> -> vector<16x32xf32>
    %c0_53 = arith.constant 0 : index
    %c0_54 = arith.constant 0 : index
    %c0_55 = arith.constant 0 : index
    %108 = vector.load %arg11[%c0_53, %c0_54, %c0_55] : memref<2x1x32xf32, #tpu.memory_space<vmem>>, vector<1x1x32xf32>
    %109 = vector.shape_cast %108 : vector<1x1x32xf32> to vector<1x32xf32>
    %110 = vector.broadcast %109 : vector<1x32xf32> to vector<16x32xf32>
    %111 = arith.addf %107, %110 : vector<16x32xf32>
    %112 = arith.addf %111, %32 : vector<16x32xf32>
    %c0_56 = arith.constant 0 : index
    %c0_57 = arith.constant 0 : index
    %c0_58 = arith.constant 0 : index
    %113 = vector.load %arg12[%c0_56, %c0_57, %c0_58] : memref<2x1x32xf32, #tpu.memory_space<vmem>>, vector<1x1x32xf32>
    %114 = vector.shape_cast %113 : vector<1x1x32xf32> to vector<1x32xf32>
    %c0_59 = arith.constant 0 : index
    %c0_60 = arith.constant 0 : index
    %c0_61 = arith.constant 0 : index
    %115 = vector.load %arg13[%c0_59, %c0_60, %c0_61] : memref<2x1x32xf32, #tpu.memory_space<vmem>>, vector<1x1x32xf32>
    %116 = vector.shape_cast %115 : vector<1x1x32xf32> to vector<1x32xf32>
    %cst_62 = arith.constant dense<0.000000e+00> : vector<16xf32>
    %117 = vector.multi_reduction <add>, %112, %cst_62 [1] : vector<16x32xf32> to vector<16xf32>
    %118 = vector.shape_cast %117 : vector<16xf32> to vector<16x1xf32>
    %cst_63 = arith.constant 3.200000e+01 : f32
    %119 = vector.broadcast %cst_63 : f32 to vector<16x1xf32>
    %120 = arith.divf %118, %119 : vector<16x1xf32>
    %121 = vector.broadcast %120 : vector<16x1xf32> to vector<16x32xf32>
    %122 = arith.subf %112, %121 : vector<16x32xf32>
    %123 = arith.mulf %122, %122 : vector<16x32xf32>
    %cst_64 = arith.constant dense<0.000000e+00> : vector<16xf32>
    %124 = vector.multi_reduction <add>, %123, %cst_64 [1] : vector<16x32xf32> to vector<16xf32>
    %125 = vector.shape_cast %124 : vector<16xf32> to vector<16x1xf32>
    %cst_65 = arith.constant 3.200000e+01 : f32
    %126 = vector.broadcast %cst_65 : f32 to vector<16x1xf32>
    %127 = arith.divf %125, %126 : vector<16x1xf32>
    %128 = vector.broadcast %120 : vector<16x1xf32> to vector<16x32xf32>
    %129 = arith.subf %112, %128 : vector<16x32xf32>
    %cst_66 = arith.constant 9.99999974E-6 : f32
    %130 = vector.broadcast %cst_66 : f32 to vector<16x1xf32>
    %131 = arith.addf %127, %130 : vector<16x1xf32>
    %132 = math.rsqrt %131 : vector<16x1xf32>
    %133 = vector.broadcast %132 : vector<16x1xf32> to vector<16x32xf32>
    %134 = arith.mulf %129, %133 : vector<16x32xf32>
    %135 = vector.broadcast %114 : vector<1x32xf32> to vector<16x32xf32>
    %136 = arith.mulf %134, %135 : vector<16x32xf32>
    %137 = vector.broadcast %116 : vector<1x32xf32> to vector<16x32xf32>
    %138 = arith.addf %136, %137 : vector<16x32xf32>
    %139 = arith.truncf %138 : vector<16x32xf32> to vector<16x32xbf16>
    %c0_67 = arith.constant 0 : index
    %c0_68 = arith.constant 0 : index
    %c0_69 = arith.constant 0 : index
    %140 = vector.load %arg14[%c0_67, %c0_68, %c0_69] : memref<2x32x64xbf16, #tpu.memory_space<vmem>>, vector<1x32x64xbf16>
    %141 = vector.shape_cast %140 : vector<1x32x64xbf16> to vector<32x64xbf16>
    %cst_70 = arith.constant dense<0.000000e+00> : vector<16x64xf32>
    %142 = tpu.matmul %139, %141, %cst_70 {dimension_numbers = #tpu.dot_dimension_numbers<[1], [0], [0], [1], [0, 0, 1, 1], [], []>} : vector<16x32xbf16>, vector<32x64xbf16>, vector<16x64xf32> -> vector<16x64xf32>
    %c0_71 = arith.constant 0 : index
    %c0_72 = arith.constant 0 : index
    %c0_73 = arith.constant 0 : index
    %143 = vector.load %arg15[%c0_71, %c0_72, %c0_73] : memref<2x1x64xf32, #tpu.memory_space<vmem>>, vector<1x1x64xf32>
    %144 = vector.shape_cast %143 : vector<1x1x64xf32> to vector<1x64xf32>
    %145 = vector.broadcast %144 : vector<1x64xf32> to vector<16x64xf32>
    %146 = arith.addf %142, %145 : vector<16x64xf32>
    %cst_74 = arith.constant 0.000000e+00 : f32
    %147 = vector.broadcast %cst_74 : f32 to vector<16x64xf32>
    %148 = arith.maximumf %146, %147 : vector<16x64xf32>
    %149 = arith.truncf %148 : vector<16x64xf32> to vector<16x64xbf16>
    %c0_75 = arith.constant 0 : index
    %c0_76 = arith.constant 0 : index
    %c0_77 = arith.constant 0 : index
    %150 = vector.load %arg16[%c0_75, %c0_76, %c0_77] : memref<2x64x32xbf16, #tpu.memory_space<vmem>>, vector<1x64x32xbf16>
    %151 = vector.shape_cast %150 : vector<1x64x32xbf16> to vector<64x32xbf16>
    %cst_78 = arith.constant dense<0.000000e+00> : vector<16x32xf32>
    %152 = tpu.matmul %149, %151, %cst_78 {dimension_numbers = #tpu.dot_dimension_numbers<[1], [0], [0], [1], [0, 0, 1, 1], [], []>} : vector<16x64xbf16>, vector<64x32xbf16>, vector<16x32xf32> -> vector<16x32xf32>
    %c0_79 = arith.constant 0 : index
    %c0_80 = arith.constant 0 : index
    %c0_81 = arith.constant 0 : index
    %153 = vector.load %arg17[%c0_79, %c0_80, %c0_81] : memref<2x1x32xf32, #tpu.memory_space<vmem>>, vector<1x1x32xf32>
    %154 = vector.shape_cast %153 : vector<1x1x32xf32> to vector<1x32xf32>
    %155 = vector.broadcast %154 : vector<1x32xf32> to vector<16x32xf32>
    %156 = arith.addf %152, %155 : vector<16x32xf32>
    %157 = arith.addf %156, %138 : vector<16x32xf32>
    %c0_82 = arith.constant 0 : index
    %c0_83 = arith.constant 0 : index
    %c0_84 = arith.constant 0 : index
    %158 = vector.load %arg18[%c0_82, %c0_83, %c0_84] : memref<2x1x32xf32, #tpu.memory_space<vmem>>, vector<1x1x32xf32>
    %159 = vector.shape_cast %158 : vector<1x1x32xf32> to vector<1x32xf32>
    %c0_85 = arith.constant 0 : index
    %c0_86 = arith.constant 0 : index
    %c0_87 = arith.constant 0 : index
    %160 = vector.load %arg19[%c0_85, %c0_86, %c0_87] : memref<2x1x32xf32, #tpu.memory_space<vmem>>, vector<1x1x32xf32>
    %161 = vector.shape_cast %160 : vector<1x1x32xf32> to vector<1x32xf32>
    %cst_88 = arith.constant dense<0.000000e+00> : vector<16xf32>
    %162 = vector.multi_reduction <add>, %157, %cst_88 [1] : vector<16x32xf32> to vector<16xf32>
    %163 = vector.shape_cast %162 : vector<16xf32> to vector<16x1xf32>
    %cst_89 = arith.constant 3.200000e+01 : f32
    %164 = vector.broadcast %cst_89 : f32 to vector<16x1xf32>
    %165 = arith.divf %163, %164 : vector<16x1xf32>
    %166 = vector.broadcast %165 : vector<16x1xf32> to vector<16x32xf32>
    %167 = arith.subf %157, %166 : vector<16x32xf32>
    %168 = arith.mulf %167, %167 : vector<16x32xf32>
    %cst_90 = arith.constant dense<0.000000e+00> : vector<16xf32>
    %169 = vector.multi_reduction <add>, %168, %cst_90 [1] : vector<16x32xf32> to vector<16xf32>
    %170 = vector.shape_cast %169 : vector<16xf32> to vector<16x1xf32>
    %cst_91 = arith.constant 3.200000e+01 : f32
    %171 = vector.broadcast %cst_91 : f32 to vector<16x1xf32>
    %172 = arith.divf %170, %171 : vector<16x1xf32>
    %173 = vector.broadcast %165 : vector<16x1xf32> to vector<16x32xf32>
    %174 = arith.subf %157, %173 : vector<16x32xf32>
    %cst_92 = arith.constant 9.99999974E-6 : f32
    %175 = vector.broadcast %cst_92 : f32 to vector<16x1xf32>
    %176 = arith.addf %172, %175 : vector<16x1xf32>
    %177 = math.rsqrt %176 : vector<16x1xf32>
    %178 = vector.broadcast %177 : vector<16x1xf32> to vector<16x32xf32>
    %179 = arith.mulf %174, %178 : vector<16x32xf32>
    %180 = vector.broadcast %159 : vector<1x32xf32> to vector<16x32xf32>
    %181 = arith.mulf %179, %180 : vector<16x32xf32>
    %182 = vector.broadcast %161 : vector<1x32xf32> to vector<16x32xf32>
    %183 = arith.addf %181, %182 : vector<16x32xf32>
    %184 = arith.truncf %183 : vector<16x32xf32> to vector<16x32xbf16>
    %c1_93 = arith.constant 1 : index
    %c0_94 = arith.constant 0 : index
    %c0_95 = arith.constant 0 : index
    %185 = vector.load %arg8[%c1_93, %c0_94, %c0_95] : memref<2x32x96xbf16, #tpu.memory_space<vmem>>, vector<1x32x96xbf16>
    %186 = vector.shape_cast %185 : vector<1x32x96xbf16> to vector<32x96xbf16>
    %cst_96 = arith.constant dense<0.000000e+00> : vector<16x96xf32>
    %187 = tpu.matmul %184, %186, %cst_96 {dimension_numbers = #tpu.dot_dimension_numbers<[1], [0], [0], [1], [0, 0, 1, 1], [], []>} : vector<16x32xbf16>, vector<32x96xbf16>, vector<16x96xf32> -> vector<16x96xf32>
    %c1_97 = arith.constant 1 : index
    %c0_98 = arith.constant 0 : index
    %c0_99 = arith.constant 0 : index
    %188 = vector.load %arg9[%c1_97, %c0_98, %c0_99] : memref<2x1x96xf32, #tpu.memory_space<vmem>>, vector<1x1x96xf32>
    %189 = vector.shape_cast %188 : vector<1x1x96xf32> to vector<1x96xf32>
    %190 = vector.broadcast %189 : vector<1x96xf32> to vector<16x96xf32>
    %191 = arith.addf %187, %190 : vector<16x96xf32>
    %192 = vector.extract_strided_slice %191 {offsets = [0, 0], sizes = [16, 32], strides = [1, 1]} : vector<16x96xf32> to vector<16x32xf32>
    %193 = vector.extract_strided_slice %191 {offsets = [0, 32], sizes = [16, 32], strides = [1, 1]} : vector<16x96xf32> to vector<16x32xf32>
    %194 = tpu.transpose %193, [1, 0] : vector<16x32xf32> -> vector<32x16xf32>
    %195 = arith.truncf %194 : vector<32x16xf32> to vector<32x16xbf16>
    %196 = vector.extract_strided_slice %191 {offsets = [0, 64], sizes = [16, 32], strides = [1, 1]} : vector<16x96xf32> to vector<16x32xf32>
    %cst_100 = arith.constant 0.000000e+00 : f32
    %197 = vector.broadcast %cst_100 : f32 to vector<16x32xf32>
    %c0_101 = arith.constant 0 : index
    %c0_102 = arith.constant 0 : index
    %c0_103 = arith.constant 0 : index
    %198 = vector.load %arg3[%c0_101, %c0_102, %c0_103] : memref<2x1x32xf32, #tpu.memory_space<vmem>>, vector<1x1x32xf32>
    %199 = vector.shape_cast %198 : vector<1x1x32xf32> to vector<1x32xf32>
    %200 = vector.broadcast %199 : vector<1x32xf32> to vector<16x32xf32>
    %201 = arith.mulf %192, %200 : vector<16x32xf32>
    %202 = arith.truncf %201 : vector<16x32xf32> to vector<16x32xbf16>
    %cst_104 = arith.constant dense<0.000000e+00> : vector<16x16xf32>
    %203 = tpu.matmul %202, %195, %cst_104 {dimension_numbers = #tpu.dot_dimension_numbers<[1], [0], [0], [1], [0, 0, 1, 1], [], []>} : vector<16x32xbf16>, vector<32x16xbf16>, vector<16x16xf32> -> vector<16x16xf32>
    %cst_105 = arith.constant 2.500000e-01 : f32
    %204 = vector.broadcast %cst_105 : f32 to vector<16x16xf32>
    %205 = arith.mulf %203, %204 : vector<16x16xf32>
    %206 = arith.addf %205, %33 : vector<16x16xf32>
    %cst_106 = arith.constant dense<0xFF800000> : vector<16xf32>
    %207 = vector.multi_reduction <maximumf>, %206, %cst_106 [1] : vector<16x16xf32> to vector<16xf32>
    %208 = vector.shape_cast %207 : vector<16xf32> to vector<16x1xf32>
    %209 = vector.broadcast %208 : vector<16x1xf32> to vector<16x16xf32>
    %210 = arith.subf %206, %209 : vector<16x16xf32>
    %211 = math.exp %210 : vector<16x16xf32>
    %cst_107 = arith.constant dense<0.000000e+00> : vector<16xf32>
    %212 = vector.multi_reduction <add>, %211, %cst_107 [1] : vector<16x16xf32> to vector<16xf32>
    %213 = vector.shape_cast %212 : vector<16xf32> to vector<16x1xf32>
    %214 = tpu.reciprocal %213 {approx = true} : vector<16x1xf32> -> vector<16x1xf32>
    %215 = vector.broadcast %214 : vector<16x1xf32> to vector<16x16xf32>
    %216 = arith.mulf %211, %215 : vector<16x16xf32>
    %c1_108 = arith.constant 1 : index
    %c0_109 = arith.constant 0 : index
    %c0_110 = arith.constant 0 : index
    %c0_111 = arith.constant 0 : index
    %217 = vector.load %arg23[%c1_108, %c0_109, %c0_110, %c0_111] : memref<2x2x16x16xf32, #tpu.memory_space<vmem>>, vector<1x1x16x16xf32>
    %218 = vector.shape_cast %217 : vector<1x1x16x16xf32> to vector<16x16xf32>
    %219 = vector.shape_cast %216 : vector<16x16xf32> to vector<1x1x16x16xf32>
    tpu.vector_store %arg23[%c1_108, %c0_109, %c0_110, %c0_111], %219 {strides = array<i32>} : memref<2x2x16x16xf32, #tpu.memory_space<vmem>>, vector<1x1x16x16xf32>,
    %220 = arith.truncf %216 : vector<16x16xf32> to vector<16x16xbf16>
    %221 = vector.broadcast %199 : vector<1x32xf32> to vector<16x32xf32>
    %222 = arith.mulf %196, %221 : vector<16x32xf32>
    %223 = arith.truncf %222 : vector<16x32xf32> to vector<16x32xbf16>
    %cst_112 = arith.constant dense<0.000000e+00> : vector<16x32xf32>
    %224 = tpu.matmul %220, %223, %cst_112 {dimension_numbers = #tpu.dot_dimension_numbers<[1], [0], [0], [1], [0, 0, 1, 1], [], []>} : vector<16x16xbf16>, vector<16x32xbf16>, vector<16x32xf32> -> vector<16x32xf32>
    %225 = arith.addf %197, %224 : vector<16x32xf32>
    %c1_113 = arith.constant 1 : index
    %c0_114 = arith.constant 0 : index
    %c0_115 = arith.constant 0 : index
    %226 = vector.load %arg3[%c1_113, %c0_114, %c0_115] : memref<2x1x32xf32, #tpu.memory_space<vmem>>, vector<1x1x32xf32>
    %227 = vector.shape_cast %226 : vector<1x1x32xf32> to vector<1x32xf32>
    %228 = vector.broadcast %227 : vector<1x32xf32> to vector<16x32xf32>
    %229 = arith.mulf %192, %228 : vector<16x32xf32>
    %230 = arith.truncf %229 : vector<16x32xf32> to vector<16x32xbf16>
    %cst_116 = arith.constant dense<0.000000e+00> : vector<16x16xf32>
    %231 = tpu.matmul %230, %195, %cst_116 {dimension_numbers = #tpu.dot_dimension_numbers<[1], [0], [0], [1], [0, 0, 1, 1], [], []>} : vector<16x32xbf16>, vector<32x16xbf16>, vector<16x16xf32> -> vector<16x16xf32>
    %cst_117 = arith.constant 2.500000e-01 : f32
    %232 = vector.broadcast %cst_117 : f32 to vector<16x16xf32>
    %233 = arith.mulf %231, %232 : vector<16x16xf32>
    %234 = arith.addf %233, %33 : vector<16x16xf32>
    %cst_118 = arith.constant dense<0xFF800000> : vector<16xf32>
    %235 = vector.multi_reduction <maximumf>, %234, %cst_118 [1] : vector<16x16xf32> to vector<16xf32>
    %236 = vector.shape_cast %235 : vector<16xf32> to vector<16x1xf32>
    %237 = vector.broadcast %236 : vector<16x1xf32> to vector<16x16xf32>
    %238 = arith.subf %234, %237 : vector<16x16xf32>
    %239 = math.exp %238 : vector<16x16xf32>
    %cst_119 = arith.constant dense<0.000000e+00> : vector<16xf32>
    %240 = vector.multi_reduction <add>, %239, %cst_119 [1] : vector<16x16xf32> to vector<16xf32>
    %241 = vector.shape_cast %240 : vector<16xf32> to vector<16x1xf32>
    %242 = tpu.reciprocal %241 {approx = true} : vector<16x1xf32> -> vector<16x1xf32>
    %243 = vector.broadcast %242 : vector<16x1xf32> to vector<16x16xf32>
    %244 = arith.mulf %239, %243 : vector<16x16xf32>
    %c1_120 = arith.constant 1 : index
    %c1_121 = arith.constant 1 : index
    %c0_122 = arith.constant 0 : index
    %c0_123 = arith.constant 0 : index
    %245 = vector.load %arg23[%c1_120, %c1_121, %c0_122, %c0_123] : memref<2x2x16x16xf32, #tpu.memory_space<vmem>>, vector<1x1x16x16xf32>
    %246 = vector.shape_cast %245 : vector<1x1x16x16xf32> to vector<16x16xf32>
    %247 = vector.shape_cast %244 : vector<16x16xf32> to vector<1x1x16x16xf32>
    tpu.vector_store %arg23[%c1_120, %c1_121, %c0_122, %c0_123], %247 {strides = array<i32>} : memref<2x2x16x16xf32, #tpu.memory_space<vmem>>, vector<1x1x16x16xf32>,
    %248 = arith.truncf %244 : vector<16x16xf32> to vector<16x16xbf16>
    %249 = vector.broadcast %227 : vector<1x32xf32> to vector<16x32xf32>
    %250 = arith.mulf %196, %249 : vector<16x32xf32>
    %251 = arith.truncf %250 : vector<16x32xf32> to vector<16x32xbf16>
    %cst_124 = arith.constant dense<0.000000e+00> : vector<16x32xf32>
    %252 = tpu.matmul %248, %251, %cst_124 {dimension_numbers = #tpu.dot_dimension_numbers<[1], [0], [0], [1], [0, 0, 1, 1], [], []>} : vector<16x16xbf16>, vector<16x32xbf16>, vector<16x32xf32> -> vector<16x32xf32>
    %253 = arith.addf %225, %252 : vector<16x32xf32>
    %254 = arith.truncf %253 : vector<16x32xf32> to vector<16x32xbf16>
    %c1_125 = arith.constant 1 : index
    %c0_126 = arith.constant 0 : index
    %c0_127 = arith.constant 0 : index
    %255 = vector.load %arg10[%c1_125, %c0_126, %c0_127] : memref<2x32x32xbf16, #tpu.memory_space<vmem>>, vector<1x32x32xbf16>
    %256 = vector.shape_cast %255 : vector<1x32x32xbf16> to vector<32x32xbf16>
    %cst_128 = arith.constant dense<0.000000e+00> : vector<16x32xf32>
    %257 = tpu.matmul %254, %256, %cst_128 {dimension_numbers = #tpu.dot_dimension_numbers<[1], [0], [0], [1], [0, 0, 1, 1], [], []>} : vector<16x32xbf16>, vector<32x32xbf16>, vector<16x32xf32> -> vector<16x32xf32>
    %c1_129 = arith.constant 1 : index
    %c0_130 = arith.constant 0 : index
    %c0_131 = arith.constant 0 : index
    %258 = vector.load %arg11[%c1_129, %c0_130, %c0_131] : memref<2x1x32xf32, #tpu.memory_space<vmem>>, vector<1x1x32xf32>
    %259 = vector.shape_cast %258 : vector<1x1x32xf32> to vector<1x32xf32>
    %260 = vector.broadcast %259 : vector<1x32xf32> to vector<16x32xf32>
    %261 = arith.addf %257, %260 : vector<16x32xf32>
    %262 = arith.addf %261, %183 : vector<16x32xf32>
    %c1_132 = arith.constant 1 : index
    %c0_133 = arith.constant 0 : index
    %c0_134 = arith.constant 0 : index
    %263 = vector.load %arg12[%c1_132, %c0_133, %c0_134] : memref<2x1x32xf32, #tpu.memory_space<vmem>>, vector<1x1x32xf32>
    %264 = vector.shape_cast %263 : vector<1x1x32xf32> to vector<1x32xf32>
    %c1_135 = arith.constant 1 : index
    %c0_136 = arith.constant 0 : index
    %c0_137 = arith.constant 0 : index
    %265 = vector.load %arg13[%c1_135, %c0_136, %c0_137] : memref<2x1x32xf32, #tpu.memory_space<vmem>>, vector<1x1x32xf32>
    %266 = vector.shape_cast %265 : vector<1x1x32xf32> to vector<1x32xf32>
    %cst_138 = arith.constant dense<0.000000e+00> : vector<16xf32>
    %267 = vector.multi_reduction <add>, %262, %cst_138 [1] : vector<16x32xf32> to vector<16xf32>
    %268 = vector.shape_cast %267 : vector<16xf32> to vector<16x1xf32>
    %cst_139 = arith.constant 3.200000e+01 : f32
    %269 = vector.broadcast %cst_139 : f32 to vector<16x1xf32>
    %270 = arith.divf %268, %269 : vector<16x1xf32>
    %271 = vector.broadcast %270 : vector<16x1xf32> to vector<16x32xf32>
    %272 = arith.subf %262, %271 : vector<16x32xf32>
    %273 = arith.mulf %272, %272 : vector<16x32xf32>
    %cst_140 = arith.constant dense<0.000000e+00> : vector<16xf32>
    %274 = vector.multi_reduction <add>, %273, %cst_140 [1] : vector<16x32xf32> to vector<16xf32>
    %275 = vector.shape_cast %274 : vector<16xf32> to vector<16x1xf32>
    %cst_141 = arith.constant 3.200000e+01 : f32
    %276 = vector.broadcast %cst_141 : f32 to vector<16x1xf32>
    %277 = arith.divf %275, %276 : vector<16x1xf32>
    %278 = vector.broadcast %270 : vector<16x1xf32> to vector<16x32xf32>
    %279 = arith.subf %262, %278 : vector<16x32xf32>
    %cst_142 = arith.constant 9.99999974E-6 : f32
    %280 = vector.broadcast %cst_142 : f32 to vector<16x1xf32>
    %281 = arith.addf %277, %280 : vector<16x1xf32>
    %282 = math.rsqrt %281 : vector<16x1xf32>
    %283 = vector.broadcast %282 : vector<16x1xf32> to vector<16x32xf32>
    %284 = arith.mulf %279, %283 : vector<16x32xf32>
    %285 = vector.broadcast %264 : vector<1x32xf32> to vector<16x32xf32>
    %286 = arith.mulf %284, %285 : vector<16x32xf32>
    %287 = vector.broadcast %266 : vector<1x32xf32> to vector<16x32xf32>
    %288 = arith.addf %286, %287 : vector<16x32xf32>
    %289 = arith.truncf %288 : vector<16x32xf32> to vector<16x32xbf16>
    %c1_143 = arith.constant 1 : index
    %c0_144 = arith.constant 0 : index
    %c0_145 = arith.constant 0 : index
    %290 = vector.load %arg14[%c1_143, %c0_144, %c0_145] : memref<2x32x64xbf16, #tpu.memory_space<vmem>>, vector<1x32x64xbf16>
    %291 = vector.shape_cast %290 : vector<1x32x64xbf16> to vector<32x64xbf16>
    %cst_146 = arith.constant dense<0.000000e+00> : vector<16x64xf32>
    %292 = tpu.matmul %289, %291, %cst_146 {dimension_numbers = #tpu.dot_dimension_numbers<[1], [0], [0], [1], [0, 0, 1, 1], [], []>} : vector<16x32xbf16>, vector<32x64xbf16>, vector<16x64xf32> -> vector<16x64xf32>
    %c1_147 = arith.constant 1 : index
    %c0_148 = arith.constant 0 : index
    %c0_149 = arith.constant 0 : index
    %293 = vector.load %arg15[%c1_147, %c0_148, %c0_149] : memref<2x1x64xf32, #tpu.memory_space<vmem>>, vector<1x1x64xf32>
    %294 = vector.shape_cast %293 : vector<1x1x64xf32> to vector<1x64xf32>
    %295 = vector.broadcast %294 : vector<1x64xf32> to vector<16x64xf32>
    %296 = arith.addf %292, %295 : vector<16x64xf32>
    %cst_150 = arith.constant 0.000000e+00 : f32
    %297 = vector.broadcast %cst_150 : f32 to vector<16x64xf32>
    %298 = arith.maximumf %296, %297 : vector<16x64xf32>
    %299 = arith.truncf %298 : vector<16x64xf32> to vector<16x64xbf16>
    %c1_151 = arith.constant 1 : index
    %c0_152 = arith.constant 0 : index
    %c0_153 = arith.constant 0 : index
    %300 = vector.load %arg16[%c1_151, %c0_152, %c0_153] : memref<2x64x32xbf16, #tpu.memory_space<vmem>>, vector<1x64x32xbf16>
    %301 = vector.shape_cast %300 : vector<1x64x32xbf16> to vector<64x32xbf16>
    %cst_154 = arith.constant dense<0.000000e+00> : vector<16x32xf32>
    %302 = tpu.matmul %299, %301, %cst_154 {dimension_numbers = #tpu.dot_dimension_numbers<[1], [0], [0], [1], [0, 0, 1, 1], [], []>} : vector<16x64xbf16>, vector<64x32xbf16>, vector<16x32xf32> -> vector<16x32xf32>
    %c1_155 = arith.constant 1 : index
    %c0_156 = arith.constant 0 : index
    %c0_157 = arith.constant 0 : index
    %303 = vector.load %arg17[%c1_155, %c0_156, %c0_157] : memref<2x1x32xf32, #tpu.memory_space<vmem>>, vector<1x1x32xf32>
    %304 = vector.shape_cast %303 : vector<1x1x32xf32> to vector<1x32xf32>
    %305 = vector.broadcast %304 : vector<1x32xf32> to vector<16x32xf32>
    %306 = arith.addf %302, %305 : vector<16x32xf32>
    %307 = arith.addf %306, %288 : vector<16x32xf32>
    %c1_158 = arith.constant 1 : index
    %c0_159 = arith.constant 0 : index
    %c0_160 = arith.constant 0 : index
    %308 = vector.load %arg18[%c1_158, %c0_159, %c0_160] : memref<2x1x32xf32, #tpu.memory_space<vmem>>, vector<1x1x32xf32>
    %309 = vector.shape_cast %308 : vector<1x1x32xf32> to vector<1x32xf32>
    %c1_161 = arith.constant 1 : index
    %c0_162 = arith.constant 0 : index
    %c0_163 = arith.constant 0 : index
    %310 = vector.load %arg19[%c1_161, %c0_162, %c0_163] : memref<2x1x32xf32, #tpu.memory_space<vmem>>, vector<1x1x32xf32>
    %311 = vector.shape_cast %310 : vector<1x1x32xf32> to vector<1x32xf32>
    %cst_164 = arith.constant dense<0.000000e+00> : vector<16xf32>
    %312 = vector.multi_reduction <add>, %307, %cst_164 [1] : vector<16x32xf32> to vector<16xf32>
    %313 = vector.shape_cast %312 : vector<16xf32> to vector<16x1xf32>
    %cst_165 = arith.constant 3.200000e+01 : f32
    %314 = vector.broadcast %cst_165 : f32 to vector<16x1xf32>
    %315 = arith.divf %313, %314 : vector<16x1xf32>
    %316 = vector.broadcast %315 : vector<16x1xf32> to vector<16x32xf32>
    %317 = arith.subf %307, %316 : vector<16x32xf32>
    %318 = arith.mulf %317, %317 : vector<16x32xf32>
    %cst_166 = arith.constant dense<0.000000e+00> : vector<16xf32>
    %319 = vector.multi_reduction <add>, %318, %cst_166 [1] : vector<16x32xf32> to vector<16xf32>
    %320 = vector.shape_cast %319 : vector<16xf32> to vector<16x1xf32>
    %cst_167 = arith.constant 3.200000e+01 : f32
    %321 = vector.broadcast %cst_167 : f32 to vector<16x1xf32>
    %322 = arith.divf %320, %321 : vector<16x1xf32>
    %323 = vector.broadcast %315 : vector<16x1xf32> to vector<16x32xf32>
    %324 = arith.subf %307, %323 : vector<16x32xf32>
    %cst_168 = arith.constant 9.99999974E-6 : f32
    %325 = vector.broadcast %cst_168 : f32 to vector<16x1xf32>
    %326 = arith.addf %322, %325 : vector<16x1xf32>
    %327 = math.rsqrt %326 : vector<16x1xf32>
    %328 = vector.broadcast %327 : vector<16x1xf32> to vector<16x32xf32>
    %329 = arith.mulf %324, %328 : vector<16x32xf32>
    %330 = vector.broadcast %309 : vector<1x32xf32> to vector<16x32xf32>
    %331 = arith.mulf %329, %330 : vector<16x32xf32>
    %332 = vector.broadcast %311 : vector<1x32xf32> to vector<16x32xf32>
    %333 = arith.addf %331, %332 : vector<16x32xf32>
    %334 = arith.truncf %333 : vector<16x32xf32> to vector<16x32xbf16>
    %c0_169 = arith.constant 0 : index
    %c0_170 = arith.constant 0 : index
    %335 = vector.load %arg20[%c0_169, %c0_170] : memref<32x128xbf16, #tpu.memory_space<vmem>>, vector<32x128xbf16>
    %cst_171 = arith.constant dense<0.000000e+00> : vector<16x128xf32>
    %336 = tpu.matmul %334, %335, %cst_171 {dimension_numbers = #tpu.dot_dimension_numbers<[1], [0], [0], [1], [0, 0, 1, 1], [], []>} : vector<16x32xbf16>, vector<32x128xbf16>, vector<16x128xf32> -> vector<16x128xf32>
    %c0_172 = arith.constant 0 : index
    %c0_173 = arith.constant 0 : index
    %337 = vector.load %arg21[%c0_172, %c0_173] : memref<1x128xf32, #tpu.memory_space<vmem>>, vector<1x128xf32>
    %338 = vector.broadcast %337 : vector<1x128xf32> to vector<16x128xf32>
    %339 = arith.addf %336, %338 : vector<16x128xf32>
    %cst_174 = arith.constant 0.000000e+00 : f32
    %340 = vector.broadcast %cst_174 : f32 to vector<16x128xf32>
    %341 = arith.subf %340, %339 : vector<16x128xf32>
    %342 = math.exp %341 : vector<16x128xf32>
    %cst_175 = arith.constant 1.000000e+00 : f32
    %343 = vector.broadcast %cst_175 : f32 to vector<16x128xf32>
    %344 = arith.addf %343, %342 : vector<16x128xf32>
    %345 = tpu.reciprocal %344 {approx = true} : vector<16x128xf32> -> vector<16x128xf32>
    %c0_176 = arith.constant 0 : index
    %c0_177 = arith.constant 0 : index
    %346 = vector.load %arg22[%c0_176, %c0_177] : memref<16x128xf32, #tpu.memory_space<vmem>>, vector<16x128xf32>
    tpu.vector_store %arg22[%c0_176, %c0_177], %345 {strides = array<i32>} : memref<16x128xf32, #tpu.memory_space<vmem>>, vector<16x128xf32>,
    return
  }
}

</mosaic_0001>

<bundles_post_ra>
// kernel: eq.8
= control target key start
LH: loop header
LB: loop body
LE: loop exit
PB: predicated region body
PF: predicated region fallthrough
CT: control target
= control target key end

     0   :  { %vm8_vm0 = vcmask 64512   ;;  %vm14_vm1 = vcmask 130112   ;;  %s42_s0 = inlined_call_operand.vmem [shape: s32[2,8], index: 0, kind: input, shape index: {}]   ;;  %s43_s1 = inlined_call_operand.vmem [shape: s32[16], index: 1, kind: output, shape index: {}]  }
   0x1   :  { %v5_v0 = vld [vmem:[%s42_s0] sm:$0x3]  ;;  %s25_s0 = smov 8  }
   0x2   :  { %6 = vst [vmem:[#allocation1] sm:$0x3] %v5_v0 }
   0x9   :  { %v11_v1 = vld [vmem:[#allocation1 + $0x1] sm:$0x1]   ;;  %v7_v2 = vld [vmem:[#allocation1] sm:$0x1]  }
   0xa   :  { %12 = vrot.lane.b32.xlu0 %v11_v1, %s25_s0  ;;  %9 = vst.msk [vmem:[#allocation0] sm:$0x1] %vm8_vm0, %v7_v2  }
  0x7c   :  { %v13_v3 = vpop.permute.xlu0 %12  }
  0x7d   :  { %15 = vst.msk [vmem:[#allocation0] sm:$0x1] %vm14_vm1, %v13_v3  }
  0x84   :  { %v20_v4 = vld [vmem:[#allocation0] sm:$0x1] }
  0x85   :  { %23 = vst [vmem:[%s43_s1] sm:$0x1] %v20_v4 }

// kernel: seq2seq_forward.1
= control target key start
LH: loop header
LB: loop body
LE: loop exit
PB: predicated region body
PF: predicated region fallthrough
CT: control target
= control target key end

     0   :  { %v2086_v0 = vmov 0.0   ;;  %vm2087_vm0 = vmmov 0   ;;  %vm100_vm1 = vcmask 261120   ;;  %s2088_s25 = smov 96   ;;  %vm364_vm2 = vcmask 130048   ;;  %s2614_s4 = inlined_call_operand.vmem [shape: bf16[32,32], index: 4, kind: input, shape index: {}]   ;;  %s2615_s0 = inlined_call_operand.vmem [shape: f32[16,32], index: 0, kind: input, shape index: {}]   ;;  %s2616_s5 = inlined_call_operand.vmem [shape: f32[1,32], index: 5, kind: input, shape index: {}]   ;;  %s2617_s8 = inlined_call_operand.vmem [shape: bf16[2,32,96], index: 8, kind: input, shape index: {}]   ;;  %s2618_s6 = inlined_call_operand.vmem [shape: f32[1,32], index: 6, kind: input, shape index: {}]   ;;  %s2619_s7 = inlined_call_operand.vmem [shape: f32[1,32], index: 7, kind: input, shape index: {}]   ;;  %s2620_s1 = inlined_call_operand.vmem [shape: f32[16,32], index: 1, kind: input, shape index: {}]   ;;  %s2621_s9 = inlined_call_operand.vmem [shape: f32[2,1,96], index: 9, kind: input, shape index: {}]   ;;  %s2622_s3 = inlined_call_operand.vmem [shape: f32[2,1,32], index: 3, kind: input, shape index: {}]   ;;  %s2623_s2 = inlined_call_operand.vmem [shape: f32[16,16], index: 2, kind: input, shape index: {}]   ;;  %s2624_s23 = inlined_call_operand.vmem [shape: f32[2,2,16,16], index: 23, kind: output, shape index: {1}]   ;;  %s2625_s10 = inlined_call_operand.vmem [shape: bf16[2,32,32], index: 10, kind: input, shape index: {}]   ;;  %s2626_s11 = inlined_call_operand.vmem [shape: f32[2,1,32], index: 11, kind: input, shape index: {}]   ;;  %s2627_s14 = inlined_call_operand.vmem [shape: bf16[2,32,64], index: 14, kind: input, shape index: {}]   ;;  %s2628_s16 = inlined_call_operand.vmem [shape: bf16[2,64,32], index: 16, kind: input, shape index: {}]   ;;  %s2629_s12 = inlined_call_operand.vmem [shape: f32[2,1,32], index: 12, kind: input, shape index: {}]   ;;  %s2630_s13 = inlined_call_operand.vmem [shape: f32[2,1,32], index: 13, kind: input, shape index: {}]   ;;  %s2631_s15 = inlined_call_operand.vmem [shape: f32[2,1,64], index: 15, kind: input, shape index: {}]   ;;  %s2632_s17 = inlined_call_operand.vmem [shape: f32[2,1,32], index: 17, kind: input, shape index: {}]   ;;  %s2633_s18 = inlined_call_operand.vmem [shape: f32[2,1,32], index: 18, kind: input, shape index: {}]   ;;  %s2634_s19 = inlined_call_operand.vmem [shape: f32[2,1,32], index: 19, kind: input, shape index: {}]   ;;  %s2635_s20 = inlined_call_operand.vmem [shape: bf16[32,128], index: 20, kind: input, shape index: {}]   ;;  %s2636_s21 = inlined_call_operand.vmem [shape: f32[1,128], index: 21, kind: input, shape index: {}]   ;;  %s2637_s22 = inlined_call_operand.vmem [shape: f32[16,128], index: 22, kind: output, shape index: {0}]  }
   0x1   :  { %2643 = sst [smem:[#allocation2_spill]] %s2614_s4  ;;  %1854 = vmatprep.subr.bf16.mxu0 %v2086_v0  ;;  %1858 = vmatprep.mubr.msk.bf16.mxu0 %vm2087_vm0, %v2086_v0  ;;  %v2283_v57 = vld [vmem:[%s2622_s3] ss:$0 sm:$0xff]  ;;  %v2290_v63 = vld [vmem:[%s2622_s3 + $0x1] ss:$0 sm:$0xff]  ;;  %vm807_vm3 = vcmask 523264  }
   0x2   :  { %2644 = sst [smem:[#allocation3_spill]] %s2615_s0  ;;  %1862 = vmatprep.subr.bf16.mxu1 %v2086_v0  ;;  %1866 = vmatprep.mubr.msk.bf16.mxu1 %vm2087_vm0, %v2086_v0 }
   0x3   :  { %2645 = sst [smem:[#allocation4_spill]] %s2616_s5 }
   0x4   :  { %2646 = sst [smem:[#allocation5_spill]] %s2617_s8 }
   0x5   :  { %2647 = sst [smem:[#allocation6_spill]] %s2618_s6 }
   0x6   :  { %2648 = sst [smem:[#allocation7_spill]] %s2619_s7 }
   0x7   :  { %2649 = sst [smem:[#allocation8_spill]] %s2620_s1  ;;  %s2089_s1 = smov 64  }
   0x8   :  { %2650 = sst [smem:[#allocation9_spill]] %s2621_s9 }
   0x9   :  { %s2651_s24 = sld [smem:[#allocation2_spill]] }
   0xa   :  { %s2652_s26 = sld [smem:[#allocation3_spill]] }
   0xb   :  { %s2653_s29 = sld [smem:[#allocation4_spill]] }
   0xc   :  { %s2654_s6 = sld [smem:[#allocation5_spill]] }
   0xd   :  { %s2655_s0 = sld [smem:[#allocation6_spill]] }
   0xe   :  { %s2656_s5 = sld [smem:[#allocation7_spill]] }
   0xf   :  { %v2002_v1 = vld [vmem:[%s2651_s24 + $0x8] sm:$0xff]   ;;  %v2003_v2 = vld [vmem:[%s2651_s24] sm:$0xff]   ;;  %s2657_s28 = sld [smem:[#allocation8_spill]] }
  0x10   :  { %1855 = vmatpush3.bf16.msra.mxu0 %v2002_v1  ;;  %v74_v3 = vld [vmem:[%s2652_s26] sm:$0xff]  ;;  %v75_v4 = vld [vmem:[%s2652_s26 + $0x8] sm:$0xff]  ;;  %s2658_s24 = sld [smem:[#allocation9_spill]] }
  0x11   :  { %1856 = vmatprep.subr.bf16.mxu0 %v2086_v0  ;;  %v76_v5 = vpack.c.bf16 %v75_v4, %v74_v3  ;;  %v1698_v6 = vld [vmem:[%s2653_s29] ss:$0 sm:$0xff] }
  0x12   :  { %v2004_v25 = vld [vmem:[%s2654_s6 + $0x8] sm:$0xff]   ;;  %v2005_v26 = vld [vmem:[%s2654_s6] sm:$0xff]  }
  0x13   :  { %1863 = vmatpush3.bf16.msra.mxu1 %v2004_v25  ;;  %v1702_v34 = vld [vmem:[%s2655_s0] ss:$0 sm:$0xff] }
  0x14   :  { %1857 = vmatpush3.bf16.msra.mxu0 %v2003_v2  ;;  %1864 = vmatprep.subr.bf16.mxu1 %v2086_v0  ;;  %v1703_v38 = vld [vmem:[%s2656_s5] ss:$0 sm:$0xff] }
  0x15   :  { %1870 = vmatprep.subr.bf16.mxu0 %v2086_v0  ;;  %v190_v42 = vld [vmem:[%s2657_s28] sm:$0xff]  ;;  %v191_v43 = vld [vmem:[%s2657_s28 + $0x8] sm:$0xff] }
  0x16   :  { %v1704_v48 = vld [vmem:[%s2658_s24] ss:$0 sm:$0xff] }
  0x17   :  { %1859 = vmatmul.mubr.msk.bf16.vlgmr.msra.gmra.mxu0 %vm100_vm1, %v76_v5  ;;  %1865 = vmatpush3.bf16.msra.mxu1 %v2005_v26 }
  0x18   :  { %1874 = vmatprep.mubr.msk.bf16.mxu0 %vm2087_vm0, %v2086_v0  ;;  %1878 = vmatprep.subr.bf16.mxu1 %v2086_v0 }
  0xd7   :  { %v138_v7 = vpop.f32.mrf.mxu0 }
  0xd8   :  { %v139_v8 = vadd.f32 %v1698_v6, %v138_v7 }
  0xd9   :  { %v1860_v9 = vpop.f32.mrf.mxu0 }
  0xda   :  { %v147_v10 = vsel %vm100_vm1, %v139_v8, 0.0 }
  0xdb   :  { %148 = vadd.xlane.f32.xlu0 %v147_v10  ;;  %v141_v11 = vpop.f32.mrf.mxu0  ;;  %v2313_v10 = vld [vmem:[%s2623_s2] sm:$0xff] }
  0xdc   :  { %v142_v12 = vadd.f32 %v1698_v6, %v141_v11 }
  0xdd   :  { %v1861_v13 = vpop.f32.mrf.mxu0 }
  0xde   :  { %v150_v14 = vsel %vm100_vm1, %v142_v12, 0.0 }
  0xdf   :  { %151 = vadd.xlane.f32.xlu0 %v150_v14 }
 0x164   :  { %v149_v15 = vpop.xlane.xlu0 %148 }
 0x165   :  { %v154_v16 = vmul.f32 0.03125, %v149_v15 }
 0x167   :  { %v156_v17 = vsub.f32 %v139_v8, %v154_v16 }
 0x168   :  { %v152_v18 = vpop.xlane.xlu0 %151 }
 0x169   :  { %v155_v19 = vmul.f32 0.03125, %v152_v18  ;;  %v158_v20 = vmul.f32 %v156_v17, %v156_v17 }
 0x16b   :  { %v157_v21 = vsub.f32 %v142_v12, %v155_v19  ;;  %v160_v22 = vsel %vm100_vm1, %v158_v20, 0.0 }
 0x16c   :  { %161 = vadd.xlane.f32.xlu1 %v160_v22 }
 0x16d   :  { %v159_v23 = vmul.f32 %v157_v21, %v157_v21 }
 0x16f   :  { %v163_v24 = vsel %vm100_vm1, %v159_v23, 0.0  ;;  %v2321_v23 = vld [vmem:[%s2623_s2 + $0x8] sm:$0xff] }
 0x170   :  { %164 = vadd.xlane.f32.xlu1 %v163_v24 }
 0x1f5   :  { %v162_v27 = vpop.xlane.xlu1 %161 }
 0x1f6   :  { %v166_v28 = vmul.f32 0.03125, %v162_v27 }
 0x1f8   :  { %v168_v29 = vadd.f32 1e-05, %v166_v28 }
 0x1f9   :  { %v165_v30 = vpop.xlane.xlu1 %164 }
 0x1fa   :  { %2026 = vrsqrt.f32 %v168_v29  ;;  %v167_v31 = vmul.f32 0.03125, %v165_v30 }
 0x1fc   :  { %v169_v32 = vadd.f32 1e-05, %v167_v31 }
 0x1fe   :  { %2028 = vrsqrt.f32 %v169_v32 }
 0x207   :  { %v2027_v33 = vpop.eup %2026 }
 0x208   :  { %v172_v35 = vmul.f32 %v2027_v33, %v156_v17 }
 0x20a   :  { %v180_v36 = vmul.f32 %v1702_v34, %v172_v35 }
 0x20b   :  { %v2029_v37 = vpop.eup %2028 }
 0x20c   :  { %v173_v39 = vmul.f32 %v2029_v37, %v157_v21  ;;  %v188_v41 = vadd.f32 %v1703_v38, %v180_v36 }
 0x20e   :  { %v181_v40 = vmul.f32 %v1702_v34, %v173_v39  ;;  %v2260_v45 = vadd.f32 %v190_v42, %v188_v41 }
 0x210   :  { %v189_v44 = vadd.f32 %v1703_v38, %v181_v40 }
 0x212   :  { %v2262_v46 = vadd.f32 %v191_v43, %v189_v44 }
 0x214   :  { %v196_v47 = vpack.c.bf16 %v2262_v46, %v2260_v45 }
 0x216   :  { %1867 = vmatmul.mubr.msk.bf16.vlgmr.msra.gmra.mxu1 %vm100_vm1, %v196_v47 }
 0x217   :  { %1882 = vmatprep.mubr.msk.bf16.mxu1 %vm2087_vm0, %v2086_v0 }
 0x2d6   :  { %v257_v49 = vpop.f32.mrf.mxu1 }
 0x2d7   :  { %v2272_v50 = vadd.f32 %v1704_v48, %v257_v49 }
 0x2d8   :  { %v1868_v51 = vpop.f32.mrf.mxu1 }
 0x2d9   :  { %266 = vrot.lane.b32.xlu0 %v2272_v50, %s2088_s25  ;;  %v313_v4 = vmul.f32 %v2283_v57, %v2272_v50  ;;  %v404_v5 = vmul.f32 %v2290_v63, %v2272_v50 }
 0x2da   :  { %v260_v52 = vpop.f32.mrf.mxu1 }
 0x2db   :  { %v2276_v53 = vadd.f32 %v1704_v48, %v260_v52 }
 0x2dc   :  { %v1869_v54 = vpop.f32.mrf.mxu1 }
 0x2dd   :  { %268 = vrot.lane.b32.xlu1 %v2276_v53, %s2088_s25  ;;  %v314_v1 = vmul.f32 %v2283_v57, %v2276_v53  ;;  %v405_v2 = vmul.f32 %v2290_v63, %v2276_v53 }
 0x2df   :  { %v315_v6 = vpack.c.bf16 %v314_v1, %v313_v4  ;;  %v406_v7 = vpack.c.bf16 %v405_v2, %v404_v5 }
 0x34b   :  { %v267_v55 = vpop.permute.xlu0 %266 }
 0x34c   :  { %272 = vxpose.xlu1.b32.start [1/2] (short) (narrow) %v267_v55, 32 }
 0x34f   :  { %v269_v56 = vpop.permute.xlu1 %268 }
 0x350   :  { %273 = vxpose.xlu1.b32.end [2/2] (short) (narrow) %v269_v56, 32 }
 0x376   :  { %390 = vrot.lane.b32.xlu1 %v2283_v57, %s2089_s1 }
 0x3c8   :  { %v288_v58 = vpop.trf.xlu1 }
 0x3cc   :  { %v289_v59 = vpop.trf.xlu1 }
 0x3cd   :  { %v304_v3 = vpack.c.bf16 %v289_v59, %v288_v58 }
 0x3d0   :  { %v290_v60 = vpop.trf.xlu1 }
 0x3d4   :  { %v291_v61 = vpop.trf.xlu1 }
 0x3d5   :  { %v305_v62 = vpack.c.bf16 %v291_v61, %v290_v60 }
 0x3d7   :  { %1871 = vmatpush3.bf16.msra.mxu0 %v305_v62  ;;  %1879 = vmatpush3.bf16.msra.mxu1 %v305_v62 }
 0x3d8   :  { %1872 = vmatprep.subr.bf16.mxu0 %v2086_v0  ;;  %1880 = vmatprep.subr.bf16.mxu1 %v2086_v0 }
 0x3db   :  { %1873 = vmatpush3.bf16.msra.mxu0 %v304_v3  ;;  %1881 = vmatpush3.bf16.msra.mxu1 %v304_v3 }
 0x3dc   :  { %1892 = vmatprep.subr.bf16.mxu1 %v2086_v0  ;;  %1886 = vmatprep.subr.bf16.mxu0 %v2086_v0 }
 0x3de   :  { %1875 = vmatmul.mubr.msk.bf16.vlgmr.msra.gmra.mxu0 %vm100_vm1, %v315_v6  ;;  %1883 = vmatmul.mubr.msk.bf16.vlgmr.msra.gmra.mxu1 %vm100_vm1, %v406_v7 }
 0x3df   :  { %1894 = vmatprep.mubr.msk.bf16.mxu1 %vm2087_vm0, %v2086_v0  ;;  %1888 = vmatprep.mubr.msk.bf16.mxu0 %vm2087_vm0, %v2086_v0 }
 0x3e8   :  { %v391_v54 = vpop.permute.xlu1 %390 }
 0x3e9   :  { %v393_v55 = vmul.f32 %v391_v54, %v2272_v50  ;;  %v394_v56 = vmul.f32 %v391_v54, %v2276_v53  ;;  %v2009_v54 = vld [vmem:[%s2627_s14] sm:$0xff]  }
 0x3eb   :  { %v395_v58 = vpack.c.bf16 %v394_v56, %v393_v55  ;;  %v2010_v55 = vld [vmem:[%s2628_s16 + $0x18] sm:$0xff]  }
 0x49e   :  { %v353_v8 = vpop.f32.mrf.mxu0  ;;  %v444_v9 = vpop.f32.mrf.mxu1 }
 0x49f   :  { %v360_v11 = vmul.f32 0.25, %v353_v8  ;;  %v451_v12 = vmul.f32 0.25, %v444_v9 }
 0x4a0   :  { %v1876_v13 = vpop.f32.mrf.mxu0  ;;  %v1884_v14 = vpop.f32.mrf.mxu1 }
 0x4a1   :  { %v362_v15 = vadd.f32 %v360_v11, %v2313_v10  ;;  %v453_v20 = vadd.f32 %v451_v12, %v2313_v10 }
 0x4a2   :  { %v356_v16 = vpop.f32.mrf.mxu0  ;;  %v447_v17 = vpop.f32.mrf.mxu1 }
 0x4a3   :  { %v361_v18 = vmul.f32 0.25, %v356_v16  ;;  %v365_v19 = vsel %vm364_vm2, %v362_v15, -inf  ;;  %v452_v24 = vmul.f32 0.25, %v447_v17  ;;  %v455_v25 = vsel %vm364_vm2, %v453_v20, -inf  ;;  %v2006_v16 = vld [vmem:[%s2625_s10 + $0x8] sm:$0xff]   ;;  %v2007_v17 = vld [vmem:[%s2625_s10] sm:$0xff]  }
 0x4a4   :  { %v1885_v21 = vpop.f32.mrf.mxu1  ;;  %366 = vmax.xlane.f32.xlu0 %v365_v19  ;;  %v1877_v22 = vpop.f32.mrf.mxu0 }
 0x4a5   :  { %v363_v26 = vadd.f32 %v361_v18, %v2321_v23  ;;  %v454_v28 = vadd.f32 %v452_v24, %v2321_v23 }
 0x4a7   :  { %v368_v27 = vsel %vm364_vm2, %v363_v26, -inf  ;;  %v458_v29 = vsel %vm364_vm2, %v454_v28, -inf }
 0x4a8   :  { %456 = vmax.xlane.f32.xlu0 %v455_v25 }
 0x4ac   :  { %369 = vmax.xlane.f32.xlu0 %v368_v27 }
 0x4b0   :  { %459 = vmax.xlane.f32.xlu0 %v458_v29 }
 0x4c6   :  { %481 = vrot.lane.b32.xlu0 %v2290_v63, %s2089_s1 }
 0x52d   :  { %v367_v30 = vpop.xlane.xlu0 %366 }
 0x52e   :  { %v371_v31 = vsub.f32 %v362_v15, %v367_v30  ;;  %v1717_v30 = vld [vmem:[%s2626_s11] ss:$0 sm:$0xff] }
 0x530   :  { %v373_v32 = vmul.f32 1.442695, %v371_v31 }
 0x531   :  { %v457_v33 = vpop.xlane.xlu0 %456 }
 0x532   :  { %2030 = vpow2.f32 %v373_v32  ;;  %v461_v34 = vsub.f32 %v453_v20, %v457_v33 }
 0x534   :  { %v463_v35 = vmul.f32 1.442695, %v461_v34 }
 0x535   :  { %v370_v36 = vpop.xlane.xlu0 %369 }
 0x536   :  { %2032 = vpow2.f32 %v463_v35  ;;  %v372_v37 = vsub.f32 %v363_v26, %v370_v36 }
 0x538   :  { %v375_v38 = vmul.f32 1.442695, %v372_v37 }
 0x539   :  { %v460_v39 = vpop.xlane.xlu0 %459 }
 0x53a   :  { %2034 = vpow2.f32 %v375_v38  ;;  %v462_v40 = vsub.f32 %v454_v28, %v460_v39 }
 0x53c   :  { %v465_v41 = vmul.f32 1.442695, %v462_v40 }
 0x53d   :  { %v482_v59 = vpop.permute.xlu0 %481 }
 0x53e   :  { %2036 = vpow2.f32 %v465_v41  ;;  %v484_v60 = vmul.f32 %v482_v59, %v2272_v50  ;;  %v485_v61 = vmul.f32 %v482_v59, %v2276_v53 }
 0x53f   :  { %v2031_v42 = vpop.eup %2030 }
 0x540   :  { %v377_v43 = vsel %vm364_vm2, %v2031_v42, 0.0  ;;  %v486_v62 = vpack.c.bf16 %v485_v61, %v484_v60 }
 0x541   :  { %378 = vadd.xlane.f32.xlu0 %v377_v43 }
 0x543   :  { %v2033_v44 = vpop.eup %2032 }
 0x544   :  { %v467_v47 = vsel %vm364_vm2, %v2033_v44, 0.0 }
 0x545   :  { %468 = vadd.xlane.f32.xlu0 %v467_v47 }
 0x547   :  { %v2035_v48 = vpop.eup %2034 }
 0x548   :  { %v380_v49 = vsel %vm364_vm2, %v2035_v48, 0.0 }
 0x549   :  { %381 = vadd.xlane.f32.xlu1 %v380_v49 }
 0x54b   :  { %v2037_v51 = vpop.eup %2036 }
 0x54c   :  { %v470_v52 = vsel %vm364_vm2, %v2037_v51, 0.0 }
 0x54d   :  { %471 = vadd.xlane.f32.xlu0 %v470_v52 }
 0x55a   :  { %536 = vrot.lane.b32.xlu1 %v395_v58, %s2089_s1 }
 0x563   :  { %488 = vrot.lane.b32.xlu0 %v486_v62, %s2089_s1 }
 0x5ca   :  { %v379_v1 = vpop.xlane.xlu0 %378 }
 0x5cb   :  { %2038 = vrcp.f32 %v379_v1 }
 0x5ce   :  { %v469_v2 = vpop.xlane.xlu0 %468 }
 0x5cf   :  { %2040 = vrcp.f32 %v469_v2 }
 0x5d2   :  { %v382_v3 = vpop.xlane.xlu1 %381 }
 0x5d3   :  { %2042 = vrcp.f32 %v382_v3  ;;  %v1721_v3 = vld [vmem:[%s2629_s12] ss:$0 sm:$0xff] }
 0x5d6   :  { %v537_v4 = vpop.permute.xlu1 %536  ;;  %v472_v5 = vpop.xlane.xlu0 %471 }
 0x5d7   :  { %2044 = vrcp.f32 %v472_v5  ;;  %1893 = vmatpush3.bf16.msra.mxu1 %v537_v4 }
 0x5d8   :  { %v2039_v6 = vpop.eup %2038  ;;  %1906 = vmatprep.subr.bf16.mxu1 %v2086_v0 }
 0x5d9   :  { %v385_v7 = vmul.f32 %v2039_v6, %v2031_v42 }
 0x5da   :  { %v489_v50 = vpop.permute.xlu0 %488 }
 0x5db   :  { %1887 = vmatpush3.bf16.msra.mxu0 %v489_v50  ;;  %387 = vst.msk [vmem:[%s2624_s23] sm:$0xff] %vm364_vm2, %v385_v7 }
 0x5dc   :  { %v2041_v53 = vpop.eup %2040  ;;  %1898 = vmatprep.subr.bf16.mxu0 %v2086_v0 }
 0x5dd   :  { %v475_v8 = vmul.f32 %v2041_v53, %v2033_v44 }
 0x5df   :  { %1713 = vst.msk [vmem:[%s2624_s23 + $0x10] sm:$0xff] %vm364_vm2, %v475_v8 }
 0x5e0   :  { %v2043_v9 = vpop.eup %2042 }
 0x5e1   :  { %v386_v11 = vmul.f32 %v2043_v9, %v2035_v48 }
 0x5e3   :  { %388 = vst.msk [vmem:[%s2624_s23 + $0x8] sm:$0xff] %vm364_vm2, %v386_v11  ;;  %v389_v12 = vpack.c.bf16 %v386_v11, %v385_v7  ;;  %v1722_v7 = vld [vmem:[%s2630_s13] ss:$0 sm:$0xff]  ;;  %v2011_v11 = vld [vmem:[%s2628_s16 + $0x10] sm:$0xff]  }
 0x5e4   :  { %v2045_v13 = vpop.eup %2044 }
 0x5e5   :  { %1895 = vmatmul.mubr.msk.bf16.vlgmr.msra.gmra.mxu1 %vm364_vm2, %v389_v12  ;;  %v476_v14 = vmul.f32 %v2045_v13, %v2037_v51  ;;  %v2012_v12 = vld [vmem:[%s2628_s16 + $0x8] sm:$0xff]   ;;  %v2013_v13 = vld [vmem:[%s2628_s16] sm:$0xff]  }
 0x5e6   :  { %1910 = vmatprep.mubr.msk.bf16.mxu1 %vm2087_vm0, %v2086_v0 }
 0x5e7   :  { %1714 = vst.msk [vmem:[%s2624_s23 + $0x18] sm:$0xff] %vm364_vm2, %v476_v14  ;;  %v480_v15 = vpack.c.bf16 %v476_v14, %v475_v8  ;;  %v1723_v14 = vld [vmem:[%s2631_s15] ss:$0 sm:$0xff] }
 0x5e9   :  { %1889 = vmatmul.mubr.msk.bf16.vlgmr.msra.gmra.mxu0 %vm364_vm2, %v480_v15 }
 0x5ea   :  { %1902 = vmatprep.mubr.msk.bf16.mxu0 %vm2087_vm0, %v2086_v0  ;;  %1899 = vmatpush3.bf16.msra.mxu0 %v2006_v16 }
 0x5eb   :  { %1900 = vmatprep.subr.bf16.mxu0 %v2086_v0 }
 0x5ee   :  { %1901 = vmatpush3.bf16.msra.mxu0 %v2007_v17 }
 0x5ef   :  { %1914 = vmatprep.subr.bf16.mxu0 %v2086_v0 }
 0x6a5   :  { %v576_v18 = vpop.f32.mrf.mxu1 }
 0x6a7   :  { %v1896_v19 = vpop.f32.mrf.mxu1 }
 0x6a9   :  { %v528_v20 = vpop.f32.mrf.mxu0  ;;  %v579_v21 = vpop.f32.mrf.mxu1 }
 0x6aa   :  { %v577_v26 = vadd.f32 %v576_v18, %v528_v20 }
 0x6ab   :  { %v1890_v22 = vpop.f32.mrf.mxu0  ;;  %v1897_v24 = vpop.f32.mrf.mxu1 }
 0x6ad   :  { %v531_v25 = vpop.f32.mrf.mxu0 }
 0x6ae   :  { %v580_v27 = vadd.f32 %v579_v21, %v531_v25  ;;  %v1727_v25 = vld [vmem:[%s2632_s17] ss:$0 sm:$0xff] }
 0x6af   :  { %v1891_v28 = vpop.f32.mrf.mxu0 }
 0x6b0   :  { %v583_v29 = vpack.c.bf16 %v580_v27, %v577_v26 }
 0x6b2   :  { %1903 = vmatmul.mubr.msk.bf16.vlgmr.msra.gmra.mxu0 %vm100_vm1, %v583_v29 }
 0x6b3   :  { %1922 = vmatprep.mubr.msk.bf16.mxu0 %vm2087_vm0, %v2086_v0  ;;  %1915 = vmatpush3.bf16.msra.mxu0 %v2010_v55 }
 0x6b4   :  { %1916 = vmatprep.subr.bf16.mxu0 %v2086_v0 }
 0x6b7   :  { %1917 = vmatpush3.bf16.msra.mxu0 %v2011_v11 }
 0x6b8   :  { %1918 = vmatprep.subr.bf16.mxu0 %v2086_v0 }
 0x6bb   :  { %1919 = vmatpush3.bf16.msra.mxu0 %v2012_v12 }
 0x6bc   :  { %1920 = vmatprep.subr.bf16.mxu0 %v2086_v0 }
 0x6bf   :  { %1921 = vmatpush3.bf16.msra.mxu0 %v2013_v13 }
 0x6c0   :  { %1942 = vmatprep.subr.bf16.mxu0 %v2086_v0 }
 0x772   :  { %v644_v31 = vpop.f32.mrf.mxu0 }
 0x773   :  { %v645_v32 = vadd.f32 %v1717_v30, %v644_v31 }
 0x774   :  { %v1904_v33 = vpop.f32.mrf.mxu0 }
 0x775   :  { %v651_v34 = vadd.f32 %v645_v32, %v2260_v45 }
 0x776   :  { %v647_v35 = vpop.f32.mrf.mxu0 }
 0x777   :  { %v648_v36 = vadd.f32 %v1717_v30, %v647_v35  ;;  %v655_v37 = vsel %vm100_vm1, %v651_v34, 0.0 }
 0x778   :  { %656 = vadd.xlane.f32.xlu0 %v655_v37  ;;  %v1905_v38 = vpop.f32.mrf.mxu0 }
 0x779   :  { %v652_v39 = vadd.f32 %v648_v36, %v2262_v46  ;;  %v2008_v46 = vld [vmem:[%s2627_s14 + $0x8] sm:$0xff]  }
 0x77a   :  { %1907 = vmatpush3.bf16.msra.mxu1 %v2008_v46 }
 0x77b   :  { %v658_v40 = vsel %vm100_vm1, %v652_v39, 0.0  ;;  %1908 = vmatprep.subr.bf16.mxu1 %v2086_v0 }
 0x77c   :  { %659 = vadd.xlane.f32.xlu1 %v658_v40 }
 0x77e   :  { %1909 = vmatpush3.bf16.msra.mxu1 %v2009_v54 }
 0x77f   :  { %1926 = vmatprep.subr.bf16.mxu1 %v2086_v0 }
 0x801   :  { %v657_v41 = vpop.xlane.xlu0 %656 }
 0x802   :  { %v661_v42 = vmul.f32 0.03125, %v657_v41 }
 0x804   :  { %v663_v43 = vsub.f32 %v651_v34, %v661_v42 }
 0x805   :  { %v660_v44 = vpop.xlane.xlu1 %659 }
 0x806   :  { %v662_v47 = vmul.f32 0.03125, %v660_v44  ;;  %v665_v48 = vmul.f32 %v663_v43, %v663_v43 }
 0x808   :  { %v664_v49 = vsub.f32 %v652_v39, %v662_v47  ;;  %v667_v45 = vsel %vm100_vm1, %v665_v48, 0.0  ;;  %v2014_v48 = vld [vmem:[%s2654_s6 + $0x18] sm:$0xff]  }
 0x809   :  { %668 = vadd.xlane.f32.xlu0 %v667_v45 }
 0x80a   :  { %v666_v51 = vmul.f32 %v664_v49, %v664_v49 }
 0x80c   :  { %v670_v52 = vsel %vm100_vm1, %v666_v51, 0.0 }
 0x80d   :  { %671 = vadd.xlane.f32.xlu0 %v670_v52 }
 0x892   :  { %v669_v56 = vpop.xlane.xlu0 %668 }
 0x893   :  { %v673_v58 = vmul.f32 0.03125, %v669_v56 }
 0x895   :  { %v675_v59 = vadd.f32 1e-05, %v673_v58 }
 0x896   :  { %v672_v60 = vpop.xlane.xlu0 %671 }
 0x897   :  { %2046 = vrsqrt.f32 %v675_v59  ;;  %v674_v61 = vmul.f32 0.03125, %v672_v60  ;;  %v1733_v59 = vld [vmem:[%s2633_s18] ss:$0 sm:$0xff] }
 0x899   :  { %v676_v62 = vadd.f32 1e-05, %v674_v61 }
 0x89b   :  { %2048 = vrsqrt.f32 %v676_v62 }
 0x8a4   :  { %v2047_v1 = vpop.eup %2046 }
 0x8a5   :  { %v679_v2 = vmul.f32 %v2047_v1, %v663_v43  ;;  %v1734_v1 = vld [vmem:[%s2634_s19] ss:$0 sm:$0xff] }
 0x8a7   :  { %v687_v6 = vmul.f32 %v1721_v3, %v679_v2 }
 0x8a8   :  { %v2049_v4 = vpop.eup %2048 }
 0x8a9   :  { %v680_v5 = vmul.f32 %v2049_v4, %v664_v49  ;;  %v695_v53 = vadd.f32 %v1722_v7, %v687_v6  ;;  %v2015_v49 = vld [vmem:[%s2654_s6 + $0x10] sm:$0xff]   ;;  %v1740_v6 = vld [vmem:[%s2658_s24 + $0x1] ss:$0 sm:$0xff] }
 0x8ab   :  { %v688_v50 = vmul.f32 %v1721_v3, %v680_v5 }
 0x8ad   :  { %v696_v8 = vadd.f32 %v1722_v7, %v688_v50 }
 0x8af   :  { %v697_v9 = vpack.c.bf16 %v696_v8, %v695_v53 }
 0x8b1   :  { %1911 = vmatmul.mubr.msk.bf16.vlgmr.msra.gmra.mxu1 %vm100_vm1, %v697_v9 }
 0x8b2   :  { %1930 = vmatprep.mubr.msk.bf16.mxu1 %vm2087_vm0, %v2086_v0  ;;  %1927 = vmatpush3.bf16.msra.mxu1 %v2014_v48 }
 0x8b3   :  { %1928 = vmatprep.subr.bf16.mxu1 %v2086_v0 }
 0x8b6   :  { %1929 = vmatpush3.bf16.msra.mxu1 %v2015_v49 }
 0x8b7   :  { %1934 = vmatprep.subr.bf16.mxu1 %v2086_v0 }
 0x971   :  { %v758_v15 = vpop.f32.mrf.mxu1 }
 0x972   :  { %v759_v17 = vadd.f32 %v1723_v14, %v758_v15 }
 0x973   :  { %v1912_v16 = vpop.f32.mrf.mxu1 }
 0x974   :  { %v765_v21 = vmax.f32 %v759_v17, 0.0 }
 0x975   :  { %v761_v18 = vpop.f32.mrf.mxu1 }
 0x976   :  { %v762_v19 = vadd.f32 %v1723_v14, %v761_v18 }
 0x977   :  { %v1913_v20 = vpop.f32.mrf.mxu1 }
 0x978   :  { %v766_v22 = vmax.f32 %v762_v19, 0.0 }
 0x97a   :  { %v767_v24 = vpack.c.bf16 %v766_v22, %v765_v21 }
 0x97c   :  { %1923 = vmatmul.mubr.msk.bf16.vlgmr.msra.gmra.mxu0 %vm807_vm3, %v767_v24 }
 0x97d   :  { %1946 = vmatprep.mubr.msk.bf16.mxu0 %vm2087_vm0, %v2086_v0 }
 0xa3c   :  { %v845_v26 = vpop.f32.mrf.mxu0 }
 0xa3d   :  { %v846_v27 = vadd.f32 %v1727_v25, %v845_v26 }
 0xa3e   :  { %v1924_v28 = vpop.f32.mrf.mxu0 }
 0xa3f   :  { %v852_v29 = vadd.f32 %v846_v27, %v695_v53 }
 0xa40   :  { %v848_v30 = vpop.f32.mrf.mxu0 }
 0xa41   :  { %v849_v31 = vadd.f32 %v1727_v25, %v848_v30  ;;  %v856_v32 = vsel %vm100_vm1, %v852_v29, 0.0 }
 0xa42   :  { %857 = vadd.xlane.f32.xlu0 %v856_v32  ;;  %v1925_v33 = vpop.f32.mrf.mxu0 }
 0xa43   :  { %v853_v34 = vadd.f32 %v849_v31, %v696_v8 }
 0xa45   :  { %v859_v35 = vsel %vm100_vm1, %v853_v34, 0.0 }
 0xa46   :  { %860 = vadd.xlane.f32.xlu1 %v859_v35 }
 0xacb   :  { %v858_v36 = vpop.xlane.xlu0 %857 }
 0xacc   :  { %v862_v37 = vmul.f32 0.03125, %v858_v36 }
 0xace   :  { %v864_v38 = vsub.f32 %v852_v29, %v862_v37 }
 0xacf   :  { %v861_v39 = vpop.xlane.xlu1 %860 }
 0xad0   :  { %v863_v40 = vmul.f32 0.03125, %v861_v39  ;;  %v866_v41 = vmul.f32 %v864_v38, %v864_v38 }
 0xad2   :  { %v865_v42 = vsub.f32 %v853_v34, %v863_v40  ;;  %v868_v43 = vsel %vm100_vm1, %v866_v41, 0.0 }
 0xad3   :  { %869 = vadd.xlane.f32.xlu0 %v868_v43 }
 0xad4   :  { %v867_v44 = vmul.f32 %v865_v42, %v865_v42 }
 0xad6   :  { %v871_v47 = vsel %vm100_vm1, %v867_v44, 0.0 }
 0xad7   :  { %872 = vadd.xlane.f32.xlu1 %v871_v47 }
 0xb5c   :  { %v870_v45 = vpop.xlane.xlu0 %869 }
 0xb5d   :  { %v874_v51 = vmul.f32 0.03125, %v870_v45 }
 0xb5f   :  { %v876_v52 = vadd.f32 1e-05, %v874_v51 }
 0xb60   :  { %v873_v46 = vpop.xlane.xlu1 %872 }
 0xb61   :  { %2050 = vrsqrt.f32 %v876_v52  ;;  %v875_v54 = vmul.f32 0.03125, %v873_v46 }
 0xb63   :  { %v877_v55 = vadd.f32 1e-05, %v875_v54 }
 0xb65   :  { %2052 = vrsqrt.f32 %v877_v55 }
 0xb6e   :  { %v2051_v56 = vpop.eup %2050 }
 0xb6f   :  { %v880_v58 = vmul.f32 %v2051_v56, %v864_v38 }
 0xb71   :  { %v888_v62 = vmul.f32 %v1733_v59, %v880_v58 }
 0xb72   :  { %v2053_v60 = vpop.eup %2052 }
 0xb73   :  { %v881_v61 = vmul.f32 %v2053_v60, %v865_v42  ;;  %v2444_v3 = vadd.f32 %v1734_v1, %v888_v62 }
 0xb75   :  { %v889_v2 = vmul.f32 %v1733_v59, %v881_v61 }
 0xb77   :  { %v2446_v4 = vadd.f32 %v1734_v1, %v889_v2 }
 0xb79   :  { %v898_v5 = vpack.c.bf16 %v2446_v4, %v2444_v3 }
 0xb7b   :  { %1931 = vmatmul.mubr.msk.bf16.vlgmr.msra.gmra.mxu1 %vm100_vm1, %v898_v5 }
 0xb7c   :  { %1938 = vmatprep.mubr.msk.bf16.mxu1 %vm2087_vm0, %v2086_v0 }
 0xc3b   :  { %v961_v7 = vpop.f32.mrf.mxu1 }
 0xc3c   :  { %v2456_v50 = vadd.f32 %v1740_v6, %v961_v7 }
 0xc3d   :  { %v1932_v53 = vpop.f32.mrf.mxu1 }
 0xc3e   :  { %970 = vrot.lane.b32.xlu0 %v2456_v50, %s2088_s25  ;;  %v1107_v22 = vmul.f32 %v2290_v63, %v2456_v50  ;;  %v1017_v24 = vmul.f32 %v2283_v57, %v2456_v50 }
 0xc3f   :  { %v964_v8 = vpop.f32.mrf.mxu1 }
 0xc40   :  { %v2460_v9 = vadd.f32 %v1740_v6, %v964_v8 }
 0xc41   :  { %v1933_v11 = vpop.f32.mrf.mxu1 }
 0xc42   :  { %972 = vrot.lane.b32.xlu1 %v2460_v9, %s2088_s25  ;;  %v1108_v19 = vmul.f32 %v2290_v63, %v2460_v9  ;;  %v1018_v20 = vmul.f32 %v2283_v57, %v2460_v9 }
 0xc44   :  { %v1019_v25 = vpack.c.bf16 %v1018_v20, %v1017_v24  ;;  %v1109_v26 = vpack.c.bf16 %v1108_v19, %v1107_v22 }
 0xcb0   :  { %v971_v12 = vpop.permute.xlu0 %970 }
 0xcb1   :  { %976 = vxpose.xlu1.b32.start [1/2] (short) (narrow) %v971_v12, 32 }
 0xcb4   :  { %v973_v13 = vpop.permute.xlu1 %972 }
 0xcb5   :  { %977 = vxpose.xlu1.b32.end [2/2] (short) (narrow) %v973_v13, 32 }
 0xcdb   :  { %1094 = vrot.lane.b32.xlu1 %v2283_v57, %s2089_s1 }
 0xd2d   :  { %v992_v14 = vpop.trf.xlu1 }
 0xd31   :  { %v993_v15 = vpop.trf.xlu1 }
 0xd32   :  { %v1008_v21 = vpack.c.bf16 %v993_v15, %v992_v14 }
 0xd35   :  { %v994_v16 = vpop.trf.xlu1 }
 0xd39   :  { %v995_v17 = vpop.trf.xlu1 }
 0xd3a   :  { %v1009_v18 = vpack.c.bf16 %v995_v17, %v994_v16 }
 0xd3c   :  { %1935 = vmatpush3.bf16.msra.mxu1 %v1009_v18  ;;  %1943 = vmatpush3.bf16.msra.mxu0 %v1009_v18 }
 0xd3d   :  { %1936 = vmatprep.subr.bf16.mxu1 %v2086_v0  ;;  %1944 = vmatprep.subr.bf16.mxu0 %v2086_v0 }
 0xd40   :  { %1937 = vmatpush3.bf16.msra.mxu1 %v1008_v21  ;;  %1945 = vmatpush3.bf16.msra.mxu0 %v1008_v21 }
 0xd41   :  { %1956 = vmatprep.subr.bf16.mxu0 %v2086_v0  ;;  %1950 = vmatprep.subr.bf16.mxu1 %v2086_v0 }
 0xd43   :  { %1939 = vmatmul.mubr.msk.bf16.vlgmr.msra.gmra.mxu1 %vm100_vm1, %v1019_v25  ;;  %1947 = vmatmul.mubr.msk.bf16.vlgmr.msra.gmra.mxu0 %vm100_vm1, %v1109_v26 }
 0xd44   :  { %1958 = vmatprep.mubr.msk.bf16.mxu0 %vm2087_vm0, %v2086_v0  ;;  %1952 = vmatprep.mubr.msk.bf16.mxu1 %vm2087_vm0, %v2086_v0 }
 0xd4d   :  { %v1095_v6 = vpop.permute.xlu1 %1094 }
 0xd4e   :  { %v1097_v7 = vmul.f32 %v1095_v6, %v2456_v50  ;;  %v1098_v53 = vmul.f32 %v1095_v6, %v2460_v9 }
 0xd50   :  { %v1099_v8 = vpack.c.bf16 %v1098_v53, %v1097_v7 }
 0xe03   :  { %v1057_v27 = vpop.f32.mrf.mxu1  ;;  %v1147_v57 = vpop.f32.mrf.mxu0 }
 0xe04   :  { %v1064_v28 = vmul.f32 0.25, %v1057_v27  ;;  %v1154_v29 = vmul.f32 0.25, %v1147_v57 }
 0xe05   :  { %v1940_v30 = vpop.f32.mrf.mxu1  ;;  %v1948_v31 = vpop.f32.mrf.mxu0 }
 0xe06   :  { %v1066_v32 = vadd.f32 %v1064_v28, %v2313_v10  ;;  %v1156_v37 = vadd.f32 %v1154_v29, %v2313_v10  ;;  %v2016_v29 = vld [vmem:[%s2625_s10 + $0x18] sm:$0xff]   ;;  %v2017_v30 = vld [vmem:[%s2625_s10 + $0x10] sm:$0xff]  }
 0xe07   :  { %v1060_v33 = vpop.f32.mrf.mxu1  ;;  %v1150_v34 = vpop.f32.mrf.mxu0 }
 0xe08   :  { %v1065_v35 = vmul.f32 0.25, %v1060_v33  ;;  %v1068_v36 = vsel %vm364_vm2, %v1066_v32, -inf  ;;  %v1155_v40 = vmul.f32 0.25, %v1150_v34  ;;  %v1158_v41 = vsel %vm364_vm2, %v1156_v37, -inf }
 0xe09   :  { %1069 = vmax.xlane.f32.xlu0 %v1068_v36  ;;  %v1941_v38 = vpop.f32.mrf.mxu1  ;;  %v1949_v39 = vpop.f32.mrf.mxu0 }
 0xe0a   :  { %v1067_v42 = vadd.f32 %v1065_v35, %v2321_v23  ;;  %v1157_v44 = vadd.f32 %v1155_v40, %v2321_v23 }
 0xe0c   :  { %v1071_v43 = vsel %vm364_vm2, %v1067_v42, -inf  ;;  %v1161_v47 = vsel %vm364_vm2, %v1157_v44, -inf }
 0xe0d   :  { %1159 = vmax.xlane.f32.xlu0 %v1158_v41 }
 0xe11   :  { %1072 = vmax.xlane.f32.xlu0 %v1071_v43 }
 0xe15   :  { %1162 = vmax.xlane.f32.xlu0 %v1161_v47 }
 0xe2b   :  { %1184 = vrot.lane.b32.xlu0 %v2290_v63, %s2089_s1 }
 0xe92   :  { %v1070_v10 = vpop.xlane.xlu0 %1069 }
 0xe93   :  { %v1074_v48 = vsub.f32 %v1066_v32, %v1070_v10 }
 0xe95   :  { %v1076_v49 = vmul.f32 1.442695, %v1074_v48 }
 0xe96   :  { %v1160_v45 = vpop.xlane.xlu0 %1159 }
 0xe97   :  { %2054 = vpow2.f32 %v1076_v49  ;;  %v1164_v51 = vsub.f32 %v1156_v37, %v1160_v45 }
 0xe99   :  { %v1166_v52 = vmul.f32 1.442695, %v1164_v51 }
 0xe9a   :  { %v1073_v46 = vpop.xlane.xlu0 %1072 }
 0xe9b   :  { %2056 = vpow2.f32 %v1166_v52  ;;  %v1075_v54 = vsub.f32 %v1067_v42, %v1073_v46  ;;  %v1760_v42 = vld [vmem:[%s2626_s11 + $0x1] ss:$0 sm:$0xff] }
 0xe9d   :  { %v1078_v55 = vmul.f32 1.442695, %v1075_v54 }
 0xe9e   :  { %v1163_v56 = vpop.xlane.xlu0 %1162 }
 0xe9f   :  { %2058 = vpow2.f32 %v1078_v55  ;;  %v1165_v23 = vsub.f32 %v1157_v44, %v1163_v56 }
 0xea1   :  { %v1168_v58 = vmul.f32 1.442695, %v1165_v23 }
 0xea2   :  { %v1185_v11 = vpop.permute.xlu0 %1184 }
 0xea3   :  { %2060 = vpow2.f32 %v1168_v58  ;;  %v1187_v12 = vmul.f32 %v1185_v11, %v2456_v50  ;;  %v1188_v13 = vmul.f32 %v1185_v11, %v2460_v9 }
 0xea4   :  { %v2055_v59 = vpop.eup %2054 }
 0xea5   :  { %v1080_v60 = vsel %vm364_vm2, %v2055_v59, 0.0  ;;  %v1189_v14 = vpack.c.bf16 %v1188_v13, %v1187_v12  ;;  %v1766_v13 = vld [vmem:[%s2629_s12 + $0x1] ss:$0 sm:$0xff] }
 0xea6   :  { %1081 = vadd.xlane.f32.xlu0 %v1080_v60 }
 0xea8   :  { %v2057_v63 = vpop.eup %2056 }
 0xea9   :  { %v1170_v61 = vsel %vm364_vm2, %v2057_v63, 0.0 }
 0xeaa   :  { %1171 = vadd.xlane.f32.xlu0 %v1170_v61 }
 0xeac   :  { %v2059_v62 = vpop.eup %2058 }
 0xead   :  { %v1083_v1 = vsel %vm364_vm2, %v2059_v62, 0.0 }
 0xeae   :  { %1084 = vadd.xlane.f32.xlu1 %v1083_v1  ;;  %v2020_v1 = vld [vmem:[%s2628_s16 + $0x38] sm:$0xff]  }
 0xeb0   :  { %v2061_v2 = vpop.eup %2060 }
 0xeb1   :  { %v1173_v5 = vsel %vm364_vm2, %v2061_v2, 0.0 }
 0xeb2   :  { %1174 = vadd.xlane.f32.xlu0 %v1173_v5 }
 0xebf   :  { %1239 = vrot.lane.b32.xlu1 %v1099_v8, %s2089_s1 }
 0xec8   :  { %1191 = vrot.lane.b32.xlu0 %v1189_v14, %s2089_s1 }
 0xf2f   :  { %v1082_v15 = vpop.xlane.xlu0 %1081 }
 0xf30   :  { %2062 = vrcp.f32 %v1082_v15 }
 0xf33   :  { %v1172_v16 = vpop.xlane.xlu0 %1171 }
 0xf34   :  { %2064 = vrcp.f32 %v1172_v16 }
 0xf37   :  { %v1085_v17 = vpop.xlane.xlu1 %1084 }
 0xf38   :  { %2066 = vrcp.f32 %v1085_v17  ;;  %v1767_v17 = vld [vmem:[%s2630_s13 + $0x1] ss:$0 sm:$0xff] }
 0xf3b   :  { %v1240_v18 = vpop.permute.xlu1 %1239  ;;  %v1175_v19 = vpop.xlane.xlu0 %1174 }
 0xf3c   :  { %2068 = vrcp.f32 %v1175_v19  ;;  %1957 = vmatpush3.bf16.msra.mxu0 %v1240_v18 }
 0xf3d   :  { %v2063_v20 = vpop.eup %2062  ;;  %1970 = vmatprep.subr.bf16.mxu0 %v2086_v0 }
 0xf3e   :  { %v1088_v21 = vmul.f32 %v2063_v20, %v2055_v59 }
 0xf3f   :  { %v1192_v50 = vpop.permute.xlu0 %1191 }
 0xf40   :  { %1951 = vmatpush3.bf16.msra.mxu1 %v1192_v50  ;;  %1746 = vst.msk [vmem:[%s2624_s23 + $0x20] sm:$0xff] %vm364_vm2, %v1088_v21  ;;  %v2021_v50 = vld [vmem:[%s2628_s16 + $0x30] sm:$0xff]  }
 0xf41   :  { %v2065_v9 = vpop.eup %2064  ;;  %1962 = vmatprep.subr.bf16.mxu1 %v2086_v0 }
 0xf42   :  { %v1178_v22 = vmul.f32 %v2065_v9, %v2057_v63  ;;  %v2022_v9 = vld [vmem:[%s2628_s16 + $0x28] sm:$0xff]  }
 0xf44   :  { %1751 = vst.msk [vmem:[%s2624_s23 + $0x30] sm:$0xff] %vm364_vm2, %v1178_v22 }
 0xf45   :  { %v2067_v24 = vpop.eup %2066 }
 0xf46   :  { %v1089_v25 = vmul.f32 %v2067_v24, %v2059_v62  ;;  %v2019_v62 = vld [vmem:[%s2627_s14 + $0x10] sm:$0xff]   ;;  %v1773_v24 = vld [vmem:[%s2631_s15 + $0x1] ss:$0 sm:$0xff] }
 0xf48   :  { %1747 = vst.msk [vmem:[%s2624_s23 + $0x28] sm:$0xff] %vm364_vm2, %v1089_v25  ;;  %v1093_v26 = vpack.c.bf16 %v1089_v25, %v1088_v21 }
 0xf49   :  { %v2069_v27 = vpop.eup %2068 }
 0xf4a   :  { %1959 = vmatmul.mubr.msk.bf16.vlgmr.msra.gmra.mxu0 %vm364_vm2, %v1093_v26  ;;  %v1179_v57 = vmul.f32 %v2069_v27, %v2061_v2 }
 0xf4b   :  { %1974 = vmatprep.mubr.msk.bf16.mxu0 %vm2087_vm0, %v2086_v0 }
 0xf4c   :  { %1752 = vst.msk [vmem:[%s2624_s23 + $0x38] sm:$0xff] %vm364_vm2, %v1179_v57  ;;  %v1183_v28 = vpack.c.bf16 %v1179_v57, %v1178_v22  ;;  %v2023_v22 = vld [vmem:[%s2628_s16 + $0x20] sm:$0xff]  }
 0xf4e   :  { %1953 = vmatmul.mubr.msk.bf16.vlgmr.msra.gmra.mxu1 %vm364_vm2, %v1183_v28 }
 0xf4f   :  { %1966 = vmatprep.mubr.msk.bf16.mxu1 %vm2087_vm0, %v2086_v0  ;;  %1963 = vmatpush3.bf16.msra.mxu1 %v2016_v29 }
 0xf50   :  { %1964 = vmatprep.subr.bf16.mxu1 %v2086_v0 }
 0xf53   :  { %1965 = vmatpush3.bf16.msra.mxu1 %v2017_v30 }
 0xf54   :  { %1978 = vmatprep.subr.bf16.mxu1 %v2086_v0 }
0x100a   :  { %v1279_v31 = vpop.f32.mrf.mxu0 }
0x100c   :  { %v1960_v32 = vpop.f32.mrf.mxu0 }
0x100e   :  { %v1231_v33 = vpop.f32.mrf.mxu1  ;;  %v1282_v34 = vpop.f32.mrf.mxu0 }
0x100f   :  { %v1280_v38 = vadd.f32 %v1279_v31, %v1231_v33  ;;  %v1786_v33 = vld [vmem:[%s2632_s17 + $0x1] ss:$0 sm:$0xff] }
0x1010   :  { %v1954_v35 = vpop.f32.mrf.mxu1  ;;  %v1961_v36 = vpop.f32.mrf.mxu0 }
0x1012   :  { %v1234_v37 = vpop.f32.mrf.mxu1 }
0x1013   :  { %v1283_v39 = vadd.f32 %v1282_v34, %v1234_v37 }
0x1014   :  { %v1955_v40 = vpop.f32.mrf.mxu1 }
0x1015   :  { %v1286_v41 = vpack.c.bf16 %v1283_v39, %v1280_v38 }
0x1017   :  { %1967 = vmatmul.mubr.msk.bf16.vlgmr.msra.gmra.mxu1 %vm100_vm1, %v1286_v41 }
0x1018   :  { %1986 = vmatprep.mubr.msk.bf16.mxu1 %vm2087_vm0, %v2086_v0  ;;  %1979 = vmatpush3.bf16.msra.mxu1 %v2020_v1 }
0x1019   :  { %1980 = vmatprep.subr.bf16.mxu1 %v2086_v0 }
0x101c   :  { %1981 = vmatpush3.bf16.msra.mxu1 %v2021_v50 }
0x101d   :  { %1982 = vmatprep.subr.bf16.mxu1 %v2086_v0 }
0x1020   :  { %1983 = vmatpush3.bf16.msra.mxu1 %v2022_v9 }
0x1021   :  { %1984 = vmatprep.subr.bf16.mxu1 %v2086_v0 }
0x1024   :  { %1985 = vmatpush3.bf16.msra.mxu1 %v2023_v22 }
0x10d7   :  { %v1349_v43 = vpop.f32.mrf.mxu1 }
0x10d8   :  { %v1350_v44 = vadd.f32 %v1760_v42, %v1349_v43 }
0x10d9   :  { %v1968_v47 = vpop.f32.mrf.mxu1 }
0x10da   :  { %v1356_v10 = vadd.f32 %v1350_v44, %v2444_v3 }
0x10db   :  { %v1352_v48 = vpop.f32.mrf.mxu1 }
0x10dc   :  { %v1353_v49 = vadd.f32 %v1760_v42, %v1352_v48  ;;  %v1362_v45 = vsel %vm100_vm1, %v1356_v10, 0.0 }
0x10dd   :  { %1363 = vadd.xlane.f32.xlu0 %v1362_v45  ;;  %v1969_v51 = vpop.f32.mrf.mxu1 }
0x10de   :  { %v1357_v52 = vadd.f32 %v1353_v49, %v2446_v4  ;;  %v2018_v4 = vld [vmem:[%s2627_s14 + $0x18] sm:$0xff]  }
0x10df   :  { %1971 = vmatpush3.bf16.msra.mxu0 %v2018_v4 }
0x10e0   :  { %v1365_v46 = vsel %vm100_vm1, %v1357_v52, 0.0  ;;  %1972 = vmatprep.subr.bf16.mxu0 %v2086_v0 }
0x10e1   :  { %1366 = vadd.xlane.f32.xlu1 %v1365_v46 }
0x10e3   :  { %1973 = vmatpush3.bf16.msra.mxu0 %v2019_v62  ;;  %v1794_v62 = vld [vmem:[%s2633_s18 + $0x1] ss:$0 sm:$0xff] }
0x10e4   :  { %1990 = vmatprep.subr.bf16.mxu0 %v2086_v0 }
0x1166   :  { %v1364_v54 = vpop.xlane.xlu0 %1363 }
0x1167   :  { %v1368_v55 = vmul.f32 0.03125, %v1364_v54 }
0x1169   :  { %v1370_v56 = vsub.f32 %v1356_v10, %v1368_v55  ;;  %v2024_v55 = vld [vmem:[%s2635_s20 + $0x8] sm:$0xff]  }
0x116a   :  { %v1367_v23 = vpop.xlane.xlu1 %1366 }
0x116b   :  { %v1369_v58 = vmul.f32 0.03125, %v1367_v23  ;;  %v1372_v59 = vmul.f32 %v1370_v56, %v1370_v56 }
0x116d   :  { %v1371_v60 = vsub.f32 %v1357_v52, %v1369_v58  ;;  %v1374_v3 = vsel %vm100_vm1, %v1372_v59, 0.0 }
0x116e   :  { %1375 = vadd.xlane.f32.xlu0 %v1374_v3 }
0x116f   :  { %v1373_v63 = vmul.f32 %v1371_v60, %v1371_v60 }
0x1171   :  { %v1377_v61 = vsel %vm100_vm1, %v1373_v63, 0.0 }
0x1172   :  { %1378 = vadd.xlane.f32.xlu0 %v1377_v61 }
0x11f7   :  { %v1376_v2 = vpop.xlane.xlu0 %1375 }
0x11f8   :  { %v1380_v5 = vmul.f32 0.03125, %v1376_v2 }
0x11fa   :  { %v1382_v6 = vadd.f32 1e-05, %v1380_v5 }
0x11fb   :  { %v1379_v7 = vpop.xlane.xlu0 %1378 }
0x11fc   :  { %2070 = vrsqrt.f32 %v1382_v6  ;;  %v1381_v53 = vmul.f32 0.03125, %v1379_v7 }
0x11fe   :  { %v1383_v8 = vadd.f32 1e-05, %v1381_v53 }
0x1200   :  { %2072 = vrsqrt.f32 %v1383_v8 }
0x1209   :  { %v2071_v11 = vpop.eup %2070 }
0x120a   :  { %v1386_v12 = vmul.f32 %v2071_v11, %v1370_v56  ;;  %v2025_v56 = vld [vmem:[%s2635_s20] sm:$0xff]  }
0x120b   :  { %v1796_v11 = vld [vmem:[%s2636_s21] ss:$0 sm:$0xff] }
0x120c   :  { %v1394_v16 = vmul.f32 %v1766_v13, %v1386_v12 }
0x120d   :  { %v2073_v14 = vpop.eup %2072 }
0x120e   :  { %v1387_v15 = vmul.f32 %v2073_v14, %v1371_v60  ;;  %v1402_v19 = vadd.f32 %v1767_v17, %v1394_v16 }
0x1210   :  { %v1395_v18 = vmul.f32 %v1766_v13, %v1387_v15 }
0x1212   :  { %v1403_v20 = vadd.f32 %v1767_v17, %v1395_v18 }
0x1214   :  { %v1404_v21 = vpack.c.bf16 %v1403_v20, %v1402_v19 }
0x1216   :  { %1975 = vmatmul.mubr.msk.bf16.vlgmr.msra.gmra.mxu0 %vm100_vm1, %v1404_v21 }
0x1217   :  { %1994 = vmatprep.mubr.msk.bf16.mxu0 %vm2087_vm0, %v2086_v0  ;;  %1991 = vmatpush3.bf16.msra.mxu0 %v2024_v55 }
0x1218   :  { %1992 = vmatprep.subr.bf16.mxu0 %v2086_v0  ;;  %v1795_v0 = vld [vmem:[%s2634_s19 + $0x1] ss:$0 sm:$0xff] }
0x121b   :  { %1993 = vmatpush3.bf16.msra.mxu0 %v2025_v56 }
0x12d6   :  { %v1467_v25 = vpop.f32.mrf.mxu0 }
0x12d7   :  { %v1468_v27 = vadd.f32 %v1773_v24, %v1467_v25 }
0x12d8   :  { %v1976_v26 = vpop.f32.mrf.mxu0 }
0x12d9   :  { %v1474_v30 = vmax.f32 %v1468_v27, 0.0 }
0x12da   :  { %v1470_v57 = vpop.f32.mrf.mxu0 }
0x12db   :  { %v1471_v28 = vadd.f32 %v1773_v24, %v1470_v57 }
0x12dc   :  { %v1977_v29 = vpop.f32.mrf.mxu0 }
0x12dd   :  { %v1475_v31 = vmax.f32 %v1471_v28, 0.0 }
0x12df   :  { %v1476_v32 = vpack.c.bf16 %v1475_v31, %v1474_v30 }
0x12e1   :  { %1987 = vmatmul.mubr.msk.bf16.vlgmr.msra.gmra.mxu1 %vm807_vm3, %v1476_v32 }
0x13a1   :  { %v1555_v34 = vpop.f32.mrf.mxu1 }
0x13a2   :  { %v1556_v35 = vadd.f32 %v1786_v33, %v1555_v34 }
0x13a3   :  { %v1988_v36 = vpop.f32.mrf.mxu1 }
0x13a4   :  { %v1562_v37 = vadd.f32 %v1556_v35, %v1402_v19 }
0x13a5   :  { %v1558_v38 = vpop.f32.mrf.mxu1 }
0x13a6   :  { %v1559_v39 = vadd.f32 %v1786_v33, %v1558_v38  ;;  %v1568_v40 = vsel %vm100_vm1, %v1562_v37, 0.0 }
0x13a7   :  { %1569 = vadd.xlane.f32.xlu0 %v1568_v40  ;;  %v1989_v41 = vpop.f32.mrf.mxu1 }
0x13a8   :  { %v1563_v42 = vadd.f32 %v1559_v39, %v1403_v20 }
0x13aa   :  { %v1571_v43 = vsel %vm100_vm1, %v1563_v42, 0.0 }
0x13ab   :  { %1572 = vadd.xlane.f32.xlu0 %v1571_v43 }
0x1430   :  { %v1570_v44 = vpop.xlane.xlu0 %1569 }
0x1431   :  { %v1574_v47 = vmul.f32 0.03125, %v1570_v44 }
0x1433   :  { %v1576_v10 = vsub.f32 %v1562_v37, %v1574_v47 }
0x1434   :  { %v1573_v48 = vpop.xlane.xlu0 %1572 }
0x1435   :  { %v1575_v49 = vmul.f32 0.03125, %v1573_v48  ;;  %v1578_v45 = vmul.f32 %v1576_v10, %v1576_v10 }
0x1437   :  { %v1577_v51 = vsub.f32 %v1563_v42, %v1575_v49  ;;  %v1580_v52 = vsel %vm100_vm1, %v1578_v45, 0.0 }
0x1438   :  { %1581 = vadd.xlane.f32.xlu1 %v1580_v52 }
0x1439   :  { %v1579_v46 = vmul.f32 %v1577_v51, %v1577_v51 }
0x143b   :  { %v1583_v54 = vsel %vm100_vm1, %v1579_v46, 0.0 }
0x143c   :  { %1584 = vadd.xlane.f32.xlu0 %v1583_v54 }
0x14c1   :  { %v1582_v23 = vpop.xlane.xlu1 %1581 }
0x14c2   :  { %v1586_v58 = vmul.f32 0.03125, %v1582_v23 }
0x14c4   :  { %v1588_v59 = vadd.f32 1e-05, %v1586_v58 }
0x14c5   :  { %v1585_v60 = vpop.xlane.xlu0 %1584 }
0x14c6   :  { %2074 = vrsqrt.f32 %v1588_v59  ;;  %v1587_v3 = vmul.f32 0.03125, %v1585_v60 }
0x14c8   :  { %v1589_v63 = vadd.f32 1e-05, %v1587_v3 }
0x14ca   :  { %2076 = vrsqrt.f32 %v1589_v63 }
0x14d3   :  { %v2075_v61 = vpop.eup %2074 }
0x14d4   :  { %v1592_v4 = vmul.f32 %v2075_v61, %v1576_v10 }
0x14d6   :  { %v1600_v5 = vmul.f32 %v1794_v62, %v1592_v4 }
0x14d7   :  { %v2077_v1 = vpop.eup %2076 }
0x14d8   :  { %v1593_v2 = vmul.f32 %v2077_v1, %v1577_v51  ;;  %v1608_v7 = vadd.f32 %v1795_v0, %v1600_v5 }
0x14da   :  { %v1601_v6 = vmul.f32 %v1794_v62, %v1593_v2 }
0x14dc   :  { %v1609_v53 = vadd.f32 %v1795_v0, %v1601_v6 }
0x14de   :  { %v1610_v8 = vpack.c.bf16 %v1609_v53, %v1608_v7 }
0x14e0   :  { %1995 = vmatmul.mubr.msk.bf16.vlgmr.msra.gmra.mxu0 %vm100_vm1, %v1610_v8 }
0x15a0   :  { %v1671_v12 = vpop.f32.mrf.mxu0 }
0x15a1   :  { %v1672_v13 = vadd.f32 %v1796_v11, %v1671_v12 }
0x15a2   :  { %v1996_v14 = vpop.f32.mrf.mxu0 }
0x15a3   :  { %v1678_v15 = vsub.f32 0.0, %v1672_v13 }
0x15a4   :  { %v1674_v16 = vpop.f32.mrf.mxu0 }
0x15a5   :  { %v1680_v17 = vmul.f32 1.442695, %v1678_v15  ;;  %v1675_v18 = vadd.f32 %v1796_v11, %v1674_v16 }
0x15a6   :  { %v1997_v19 = vpop.f32.mrf.mxu0 }
0x15a7   :  { %2078 = vpow2.f32 %v1680_v17  ;;  %v1679_v20 = vsub.f32 0.0, %v1675_v18 }
0x15a9   :  { %v1682_v21 = vmul.f32 1.442695, %v1679_v20 }
0x15ab   :  { %2080 = vpow2.f32 %v1682_v21 }
0x15b4   :  { %v2079_v50 = vpop.eup %2078 }
0x15b5   :  { %v1684_v9 = vadd.f32 1.0, %v2079_v50 }
0x15b7   :  { %2082 = vrcp.f32 %v1684_v9 }
0x15b8   :  { %v2081_v22 = vpop.eup %2080 }
0x15b9   :  { %v1685_v24 = vadd.f32 1.0, %v2081_v22 }
0x15bb   :  { %2084 = vrcp.f32 %v1685_v24 }
0x15c4   :  { %v2083_v25 = vpop.eup %2082 }
0x15c5   :  { %1688 = vst [vmem:[%s2637_s22] sm:$0xff] %v2083_v25 }
0x15c8   :  { %v2085_v26 = vpop.eup %2084 }
0x15c9   :  { %1689 = vst [vmem:[%s2637_s22 + $0x8] sm:$0xff] %v2085_v26 }

</bundles_post_ra>
